<compile_context>
chip_gen: v7x
topology: tpu7x:2x2x1
jax: 0.10.0
libtpu: 0.0.40
codegen_flags: <defaults>
</compile_context>

<pallas_src>
import functools

import jax
import jax.numpy as jnp
from jax.experimental import pallas as pl
from jax.experimental.pallas import tpu as pltpu


def _layer_norm(z, gamma, beta, eps=1e-5):
    """Two-pass LN (used in the hoisted XLA input path and the reference)."""
    mu = jnp.mean(z, axis=-1, keepdims=True)
    var = jnp.mean((z - mu) ** 2, axis=-1, keepdims=True)
    return (z - mu) * jax.lax.rsqrt(var + eps) * gamma + beta


def _layer_norm_onepass(z, gamma, beta, eps=1e-5):
    """One-pass LN (var = E[z^2] - mean^2) — shorter serial dependency chain."""
    inv_n = 1.0 / z.shape[-1]
    mu = jnp.sum(z, axis=-1, keepdims=True) * inv_n
    ex2 = jnp.sum(z * z, axis=-1, keepdims=True) * inv_n
    var = ex2 - mu * mu
    return (z - mu) * jax.lax.rsqrt(var + eps) * gamma + beta


def _round_up(n, m):
    return (n + m - 1) // m * m


def _ln_lstm_seq_kernel(gih_ref, h0_ref, c0_ref, whh_hbm_ref,
                        bhh_ref, g_hh_ref, b_hh_ref, g_ho_ref, b_ho_ref,
                        y_ref, hT_ref, cT_ref,
                        h_s, c_s, whh_s, dma_sem,
                        *, seq_len, mask_tail, unroll):
    t_blk = pl.program_id(1)
    H = h0_ref.shape[-1]
    Tc = gih_ref.shape[0]

    @pl.when(t_blk == 0)
    def _():
        # One-time (per batch block) load of the recurrent weight into a
        # single-buffered VMEM scratch; the h/c state init overlaps the DMA.
        cp = pltpu.make_async_copy(whh_hbm_ref, whh_s, dma_sem)
        cp.start()
        h_s[...] = h0_ref[...].astype(jnp.float32)
        c_s[...] = c0_ref[...].astype(jnp.float32)
        cp.wait()

    whh = whh_s[...]            # (H, 4H) bf16, resident across all time chunks
    bhh = bhh_ref[...]
    g_hh = g_hh_ref[...]
    b_hh = b_hh_ref[...]
    g_ho = g_ho_ref[...]
    b_ho = b_ho_ref[...]

    def step(t, carry):
        h, c = carry
        # Only the small recurrent matmul stays in the sequential chain; the input
        # projection + LN_ih was hoisted out of the kernel entirely (streamed bf16).
        ghh = jnp.dot(h.astype(jnp.bfloat16), whh,
                      preferred_element_type=jnp.float32) + bhh
        gates = gih_ref[t].astype(jnp.float32) + _layer_norm_onepass(ghh, g_hh, b_hh)
        # PyTorch gate order i, f, g, o; i and f are contiguous -> one sigmoid pass.
        if_gate = jax.nn.sigmoid(gates[:, 0:2 * H])
        g_gate = jnp.tanh(gates[:, 2 * H:3 * H])
        o_gate = jax.nn.sigmoid(gates[:, 3 * H:4 * H])
        c_new = if_gate[:, H:2 * H] * c + if_gate[:, 0:H] * g_gate
        h_new = o_gate * jnp.tanh(_layer_norm_onepass(c_new, g_ho, b_ho))
        y_ref[t] = h_new.astype(y_ref.dtype)      # padded-time rows are sliced off
        if mask_tail:
            # Time axis was padded to a multiple of Tc: freeze the state for t >= T.
            valid = (t_blk * Tc + t) < seq_len
            h_new = jnp.where(valid, h_new, h)
            c_new = jnp.where(valid, c_new, c)
        return h_new, c_new

    h_fin, c_fin = jax.lax.fori_loop(0, Tc, step, (h_s[...], c_s[...]),
                                     unroll=unroll)
    h_s[...] = h_fin
    c_s[...] = c_fin

    # Final-state writeback only on the last time chunk.
    @pl.when(t_blk == pl.num_programs(1) - 1)
    def _():
        hT_ref[...] = h_fin
        cT_ref[...] = c_fin


def ln_lstm_layer(x, h0, c0, params, *, max_time_chunk=32, batch_block=None):
    """Run one LayerNormLSTMCell over the full sequence.

    x: (T, B, D) with B a multiple of 8; h0, c0: (B, H).
    Returns y (T, B, H) in bf16, h_T (B, H), c_T (B, H) in f32.
    """
    (w_ihT, w_hhT, b_ih, b_hh, g_ih, b_ih_ln,
     g_hh, b_hh_ln, g_ho, b_ho) = params
    T, B, D = x.shape
    H = h0.shape[-1]
    G = 4 * H

    # --- Hoisted input path: one throughput-friendly bf16 matmul + LN_ih for all t.
    # Stored/streamed as bf16: it only participates in an addition before f32 gates.
    a = jnp.dot(x.reshape(T * B, D).astype(jnp.bfloat16), w_ihT,
                preferred_element_type=jnp.float32) + b_ih
    gih = _layer_norm(a, g_ih, b_ih_ln).astype(jnp.bfloat16).reshape(T, B, G)

    # --- Batch blocking: keep >= 128 MXU rows per block; split only when large enough
    # so the "parallel" axis can occupy the second TensorCore on dual-TC parts.
    if batch_block is None:
        Bc = B // 2 if (B >= 256 and (B // 2) % 8 == 0) else B
    else:
        Bc = batch_block
    assert B % Bc == 0 and Bc % 8 == 0, "batch block must divide padded batch, mult of 8"

    # --- Generation-aware VMEM budget -> time-chunk size.
    try:
        vmem_cap = int(pltpu.get_tpu_info().vmem_capacity_bytes)
    except Exception:
        vmem_cap = 64 * 1024 * 1024          # conservative fallback (v7x-sized)
    vmem_budget = (vmem_cap * 3) // 4        # leave headroom for compiler scratch
    fixed = (H * G * 2                       # resident W_hh^T (bf16, single buffer)
             + 2 * Bc * H * 4                # recurrent h/c state scratch (f32)
             + 4 * 2 * Bc * H * 4            # h0, c0, h_T, c_T blocks (2 buffers each)
             + 2 * 4 * (3 * G + 2 * H)       # biases / LN params
             + (2 << 20))                    # compiler-internal margin
    per_tc = 2 * Bc * G * 2 + 2 * Bc * H * 2   # gih + y double buffers, bf16
    Tc = int(max(1, min(max_time_chunk, T, (vmem_budget - fixed) // per_tc)))

    # Pad time to a multiple of Tc (masked in-kernel) instead of falling back to Tc=1.
    Tp = _round_up(T, Tc)
    if Tp != T:
        gih = jnp.pad(gih, ((0, Tp - T), (0, 0), (0, 0)))

    need = fixed + Tc * per_tc
    vmem_limit = int(min(vmem_budget, max(32 * 1024 * 1024, 2 * need)))

    grid = (B // Bc, Tp // Tc)

    def const2(shape):
        return pl.BlockSpec(shape, lambda b, t: (0, 0))

    in_specs = [
        pl.BlockSpec((Tc, Bc, G), lambda b, t: (t, b, 0)),   # LN_ih(x W_ih^T + b_ih), bf16
        pl.BlockSpec((Bc, H), lambda b, t: (b, 0)),          # h0
        pl.BlockSpec((Bc, H), lambda b, t: (b, 0)),          # c0
        pl.BlockSpec(memory_space=pl.ANY),                   # W_hh^T (HBM, DMA'd once)
        const2((1, G)),                                      # b_hh
        const2((1, G)), const2((1, G)),                      # ln_hh gamma, beta
        const2((1, H)), const2((1, H)),                      # ln_ho gamma, beta
    ]
    out_specs = (
        pl.BlockSpec((Tc, Bc, H), lambda b, t: (t, b, 0)),   # y (bf16)
        pl.BlockSpec((Bc, H), lambda b, t: (b, 0)),          # h_T
        pl.BlockSpec((Bc, H), lambda b, t: (b, 0)),          # c_T
    )
    out_shape = (jax.ShapeDtypeStruct((Tp, B, H), jnp.bfloat16),
                 jax.ShapeDtypeStruct((B, H), jnp.float32),
                 jax.ShapeDtypeStruct((B, H), jnp.float32))

    kernel = functools.partial(
        _ln_lstm_seq_kernel,
        seq_len=T,
        mask_tail=(Tp != T),
        unroll=(True if Tc <= 8 else 8),
    )

    y, hT, cT = pl.pallas_call(
        kernel,
        out_shape=out_shape,
        grid_spec=pltpu.PrefetchScalarGridSpec(
            num_scalar_prefetch=0,
            grid=grid,
            in_specs=in_specs,
            out_specs=out_specs,
            scratch_shapes=[
                pltpu.VMEM((Bc, H), jnp.float32),   # recurrent h state
                pltpu.VMEM((Bc, H), jnp.float32),   # recurrent c state
                pltpu.VMEM((H, G), jnp.bfloat16),   # resident W_hh^T (single buffer)
                pltpu.SemaphoreType.DMA,            # weight-load semaphore
            ]),
        compiler_params=pltpu.CompilerParams(
            # time axis is a true recurrence -> "arbitrary"; batch blocks are
            # independent -> "parallel" (second TensorCore on dual-TC parts).
            dimension_semantics=("parallel", "arbitrary"),
            vmem_limit_bytes=vmem_limit),
    )(gih, h0, c0, w_hhT, b_hh, g_hh, b_hh_ln, g_ho, b_ho)
    return y[:T], hT, cT


def init_params(key, input_size, hidden_size, num_layers):
    """Parameter init mimicking nn.LSTMCell uniform(-1/sqrt(H), 1/sqrt(H)).

    Weights are stored pre-transposed and in bf16 (MXU operands); biases and
    LayerNorm affine parameters stay f32.
    """
    params = []
    in_dim = input_size
    k = 1.0 / (hidden_size ** 0.5)
    G = 4 * hidden_size
    for _ in range(num_layers):
        key, k0, k1, k2, k3 = jax.random.split(key, 5)
        w_ih = jax.random.uniform(k0, (G, in_dim), minval=-k, maxval=k)
        w_hh = jax.random.uniform(k1, (G, hidden_size), minval=-k, maxval=k)
        b_ih = jax.random.uniform(k2, (G,), minval=-k, maxval=k)
        b_hh = jax.random.uniform(k3, (G,), minval=-k, maxval=k)
        p = (w_ih.T.astype(jnp.bfloat16),                     # W_ih^T (D, 4H)
             w_hh.T.astype(jnp.bfloat16),                     # W_hh^T (H, 4H)
             b_ih.reshape(1, -1).astype(jnp.float32),
             b_hh.reshape(1, -1).astype(jnp.float32),
             jnp.ones((1, G), jnp.float32), jnp.zeros((1, G), jnp.float32),   # ln_ih
             jnp.ones((1, G), jnp.float32), jnp.zeros((1, G), jnp.float32),   # ln_hh
             jnp.ones((1, hidden_size), jnp.float32),
             jnp.zeros((1, hidden_size), jnp.float32))                        # ln_ho
        params.append(p)
        in_dim = hidden_size
    return params


def layer_norm_lstm_forward(x, hx, params, dropout=0.0):
    """Matches LayerNormLSTM.forward: returns (y, (h, c))."""
    h0, c0 = hx
    T, B, D = x.shape
    # Pad batch to the f32 sublane count (8) so vregs / MXU rows are not half empty.
    Bp = _round_up(B, 8)
    if Bp != B:
        pad = ((0, 0), (0, Bp - B), (0, 0))
        x = jnp.pad(x, pad)
        h0 = jnp.pad(h0, pad)
        c0 = jnp.pad(c0, pad)
    y = x
    hs, cs = [], []
    for i, p in enumerate(params):
        y, hT, cT = ln_lstm_layer(y, h0[i], c0[i], p)
        hs.append(hT)
        cs.append(cT)
        # TODO(synk): inter-layer F.dropout not applied (eval / dropout=0.0 path only).
    h_out = jnp.stack(hs, axis=0)[:, :B]
    c_out = jnp.stack(cs, axis=0)[:, :B]
    # y is streamed in bf16 between layers (its only consumer is a bf16 matmul);
    # return the final output in f32 to match the module's interface dtype.
    return y[:, :B].astype(jnp.float32), (h_out, c_out)


def _reference_forward(x, hx, params):
    """Pure-JAX reference with the same precision policy (bf16 matmuls, f32 rest)."""
    h_all, c_all = hx
    T = x.shape[0]
    y = x
    hs, cs = [], []
    for li, p in enumerate(params):
        (w_ihT, w_hhT, b_ih, b_hh, g_ih, b_ih_ln, g_hh, b_hh_ln, g_ho, b_ho) = p
        h = h_all[li]
        c = c_all[li]
        H = h.shape[-1]
        outs = []
        for t in range(T):
            gih = _layer_norm(jnp.dot(y[t].astype(jnp.bfloat16), w_ihT,
                                      preferred_element_type=jnp.float32) + b_ih,
                              g_ih, b_ih_ln)
            ghh = _layer_norm(jnp.dot(h.astype(jnp.bfloat16), w_hhT,
                                      preferred_element_type=jnp.float32) + b_hh,
                              g_hh, b_hh_ln)
            gates = gih + ghh
            i = jax.nn.sigmoid(gates[:, 0:H])
            f = jax.nn.sigmoid(gates[:, H:2 * H])
            g = jnp.tanh(gates[:, 2 * H:3 * H])
            o = jax.nn.sigmoid(gates[:, 3 * H:4 * H])
            c = f * c + i * g
            h = o * jnp.tanh(_layer_norm(c, g_ho, b_ho))
            outs.append(h)
        y = jnp.stack(outs, axis=0)
        hs.append(h)
        cs.append(c)
    return y, (jnp.stack(hs, 0), jnp.stack(cs, 0))


if __name__ == "__main__":
    T, B = 8, 4
    input_size, hidden_size, num_layers = 16, 32, 2

    key = jax.random.PRNGKey(0)
    kx, kh, kc, kp = jax.random.split(key, 4)
    x = jax.random.normal(kx, (T, B, input_size), dtype=jnp.float32)
    h0 = jax.random.normal(kh, (num_layers, B, hidden_size), dtype=jnp.float32)
    c0 = jax.random.normal(kc, (num_layers, B, hidden_size), dtype=jnp.float32)

    params = init_params(kp, input_size, hidden_size, num_layers)

    y, (hT, cT) = layer_norm_lstm_forward(x, (h0, c0), params)
    jax.block_until_ready((y, hT, cT))

    assert y.shape == (T, B, hidden_size)
    assert hT.shape == (num_layers, B, hidden_size)
    assert cT.shape == (num_layers, B, hidden_size)

    # Cross-check against a pure-JAX reference using the same precision policy.
    # Tolerance covers the bf16 storage of y (|h| < 1 -> abs err < ~4e-3) plus the
    # one-pass vs two-pass LayerNorm formulation difference inside the kernel.
    y_ref, (h_ref, c_ref) = _reference_forward(x, (h0, c0), params)
    tol = 2e-2
    assert float(jnp.max(jnp.abs(y - y_ref))) < tol
    assert float(jnp.max(jnp.abs(hT - h_ref))) < tol
    assert float(jnp.max(jnp.abs(cT - c_ref))) < tol

    print("KERNEL_OK")
</pallas_src>

<mosaic_0001>
module attributes {stable_mosaic.version = 11 : i64} {
  func.func @_ln_lstm_seq_kernel(%arg0: i32, %arg1: i32, %arg2: memref<8x8x128xbf16, #tpu.memory_space<vmem>>, %arg3: memref<8x32xf32, #tpu.memory_space<vmem>>, %arg4: memref<8x32xf32, #tpu.memory_space<vmem>>, %arg5: memref<32x128xbf16, #tpu.memory_space<any>>, %arg6: memref<1x128xf32, #tpu.memory_space<vmem>>, %arg7: memref<1x128xf32, #tpu.memory_space<vmem>>, %arg8: memref<1x128xf32, #tpu.memory_space<vmem>>, %arg9: memref<1x32xf32, #tpu.memory_space<vmem>>, %arg10: memref<1x32xf32, #tpu.memory_space<vmem>>, %arg11: memref<8x8x32xbf16, #tpu.memory_space<vmem>>, %arg12: memref<8x32xf32, #tpu.memory_space<vmem>>, %arg13: memref<8x32xf32, #tpu.memory_space<vmem>>, %arg14: memref<8x32xf32, #tpu.memory_space<vmem>>, %arg15: memref<8x32xf32, #tpu.memory_space<vmem>>, %arg16: memref<32x128xbf16, #tpu.memory_space<vmem>>, %arg17: memref<!tpu.dma_semaphore, #tpu.memory_space<semaphore_mem>>) attributes {dimension_semantics = [#tpu.dimension_semantics<parallel>, #tpu.dimension_semantics<arbitrary>], iteration_bounds = array<i64: 1, 1>, scalar_prefetch = 0 : i64, scratch_operands = 4 : i64, tpu.core_type = #tpu.core_type<tc>, window_params = [{transform_indices = @transform_0, window_bounds = array<i64: 8, 8, 128>}, {transform_indices = @transform_1, window_bounds = array<i64: 8, 32>}, {transform_indices = @transform_2, window_bounds = array<i64: 8, 32>}, {}, {pipeline_mode = #tpu.pipeline_mode<synchronous>, transform_indices = @transform_4, window_bounds = array<i64: 1, 128>}, {pipeline_mode = #tpu.pipeline_mode<synchronous>, transform_indices = @transform_5, window_bounds = array<i64: 1, 128>}, {pipeline_mode = #tpu.pipeline_mode<synchronous>, transform_indices = @transform_6, window_bounds = array<i64: 1, 128>}, {pipeline_mode = #tpu.pipeline_mode<synchronous>, transform_indices = @transform_7, window_bounds = array<i64: 1, 32>}, {pipeline_mode = #tpu.pipeline_mode<synchronous>, transform_indices = @transform_8, window_bounds = array<i64: 1, 32>}, {transform_indices = @transform_9, window_bounds = array<i64: 8, 8, 32>}, {transform_indices = @transform_10, window_bounds = array<i64: 8, 32>}, {transform_indices = @transform_11, window_bounds = array<i64: 8, 32>}]} {
    %c0_i32 = arith.constant 0 : i32
    %0 = arith.cmpi eq, %arg1, %c0_i32 : i32
    %1 = arith.extui %0 : i1 to i32
    %c0_i32_0 = arith.constant 0 : i32
    %2 = arith.cmpi ne, %1, %c0_i32_0 : i32
    scf.if %2 {
      tpu.enqueue_dma source(%arg5 : memref<32x128xbf16, #tpu.memory_space<any>>) target(%arg16 : memref<32x128xbf16, #tpu.memory_space<vmem>>) target_semaphore(%arg17 : memref<!tpu.dma_semaphore, #tpu.memory_space<semaphore_mem>>)
      %c0_158 = arith.constant 0 : index
      %c0_159 = arith.constant 0 : index
      %648 = vector.load %arg3[%c0_158, %c0_159] : memref<8x32xf32, #tpu.memory_space<vmem>>, vector<8x32xf32>
      %c0_160 = arith.constant 0 : index
      %c0_161 = arith.constant 0 : index
      %649 = vector.load %arg14[%c0_160, %c0_161] : memref<8x32xf32, #tpu.memory_space<vmem>>, vector<8x32xf32>
      tpu.vector_store %arg14[%c0_160, %c0_161], %648 {strides = array<i32>} : memref<8x32xf32, #tpu.memory_space<vmem>>, vector<8x32xf32>,
      %c0_162 = arith.constant 0 : index
      %c0_163 = arith.constant 0 : index
      %650 = vector.load %arg4[%c0_162, %c0_163] : memref<8x32xf32, #tpu.memory_space<vmem>>, vector<8x32xf32>
      %c0_164 = arith.constant 0 : index
      %c0_165 = arith.constant 0 : index
      %651 = vector.load %arg15[%c0_164, %c0_165] : memref<8x32xf32, #tpu.memory_space<vmem>>, vector<8x32xf32>
      tpu.vector_store %arg15[%c0_164, %c0_165], %650 {strides = array<i32>} : memref<8x32xf32, #tpu.memory_space<vmem>>, vector<8x32xf32>,
      tpu.wait_dma2 semaphore(%arg17 : memref<!tpu.dma_semaphore, #tpu.memory_space<semaphore_mem>>) src(%arg5 : memref<32x128xbf16, #tpu.memory_space<any>>) dst(%arg16 : memref<32x128xbf16, #tpu.memory_space<vmem>>)
    } else {
    }
    %c0 = arith.constant 0 : index
    %c0_1 = arith.constant 0 : index
    %3 = vector.load %arg16[%c0, %c0_1] : memref<32x128xbf16, #tpu.memory_space<vmem>>, vector<32x128xbf16>
    %c0_2 = arith.constant 0 : index
    %c0_3 = arith.constant 0 : index
    %4 = vector.load %arg6[%c0_2, %c0_3] : memref<1x128xf32, #tpu.memory_space<vmem>>, vector<1x128xf32>
    %c0_4 = arith.constant 0 : index
    %c0_5 = arith.constant 0 : index
    %5 = vector.load %arg7[%c0_4, %c0_5] : memref<1x128xf32, #tpu.memory_space<vmem>>, vector<1x128xf32>
    %c0_6 = arith.constant 0 : index
    %c0_7 = arith.constant 0 : index
    %6 = vector.load %arg8[%c0_6, %c0_7] : memref<1x128xf32, #tpu.memory_space<vmem>>, vector<1x128xf32>
    %c0_8 = arith.constant 0 : index
    %c0_9 = arith.constant 0 : index
    %7 = vector.load %arg9[%c0_8, %c0_9] : memref<1x32xf32, #tpu.memory_space<vmem>>, vector<1x32xf32>
    %c0_10 = arith.constant 0 : index
    %c0_11 = arith.constant 0 : index
    %8 = vector.load %arg10[%c0_10, %c0_11] : memref<1x32xf32, #tpu.memory_space<vmem>>, vector<1x32xf32>
    %c0_12 = arith.constant 0 : index
    %c0_13 = arith.constant 0 : index
    %9 = vector.load %arg14[%c0_12, %c0_13] : memref<8x32xf32, #tpu.memory_space<vmem>>, vector<8x32xf32>
    %c0_14 = arith.constant 0 : index
    %c0_15 = arith.constant 0 : index
    %10 = vector.load %arg15[%c0_14, %c0_15] : memref<8x32xf32, #tpu.memory_space<vmem>>, vector<8x32xf32>
    %c0_i32_16 = arith.constant 0 : i32
    %11 = arith.truncf %9 : vector<8x32xf32> to vector<8x32xbf16>
    %cst = arith.constant dense<0.000000e+00> : vector<8x128xf32>
    %12 = tpu.matmul %11, %3, %cst {dimension_numbers = #tpu.dot_dimension_numbers<[1], [0], [0], [1], [0, 0, 1, 1], [], []>} : vector<8x32xbf16>, vector<32x128xbf16>, vector<8x128xf32> -> vector<8x128xf32>
    %13 = vector.broadcast %4 : vector<1x128xf32> to vector<8x128xf32>
    %14 = arith.addf %12, %13 : vector<8x128xf32>
    %15 = arith.index_cast %c0_i32_16 : i32 to index
    %c0_17 = arith.constant 0 : index
    %c0_18 = arith.constant 0 : index
    %16 = vector.load %arg2[%15, %c0_17, %c0_18] : memref<8x8x128xbf16, #tpu.memory_space<vmem>>, vector<1x8x128xbf16>
    %17 = vector.shape_cast %16 : vector<1x8x128xbf16> to vector<8x128xbf16>
    %18 = arith.extf %17 : vector<8x128xbf16> to vector<8x128xf32>
    %cst_19 = arith.constant dense<0.000000e+00> : vector<8xf32>
    %19 = vector.multi_reduction <add>, %14, %cst_19 [1] : vector<8x128xf32> to vector<8xf32>
    %20 = vector.shape_cast %19 : vector<8xf32> to vector<8x1xf32>
    %cst_20 = arith.constant 7.812500e-03 : f32
    %21 = vector.broadcast %cst_20 : f32 to vector<8x1xf32>
    %22 = arith.mulf %20, %21 : vector<8x1xf32>
    %23 = arith.mulf %14, %14 : vector<8x128xf32>
    %cst_21 = arith.constant dense<0.000000e+00> : vector<8xf32>
    %24 = vector.multi_reduction <add>, %23, %cst_21 [1] : vector<8x128xf32> to vector<8xf32>
    %25 = vector.shape_cast %24 : vector<8xf32> to vector<8x1xf32>
    %cst_22 = arith.constant 7.812500e-03 : f32
    %26 = vector.broadcast %cst_22 : f32 to vector<8x1xf32>
    %27 = arith.mulf %25, %26 : vector<8x1xf32>
    %28 = arith.mulf %22, %22 : vector<8x1xf32>
    %29 = arith.subf %27, %28 : vector<8x1xf32>
    %30 = vector.broadcast %22 : vector<8x1xf32> to vector<8x128xf32>
    %31 = arith.subf %14, %30 : vector<8x128xf32>
    %cst_23 = arith.constant 9.99999974E-6 : f32
    %32 = vector.broadcast %cst_23 : f32 to vector<8x1xf32>
    %33 = arith.addf %29, %32 : vector<8x1xf32>
    %34 = math.rsqrt %33 : vector<8x1xf32>
    %35 = vector.broadcast %34 : vector<8x1xf32> to vector<8x128xf32>
    %36 = arith.mulf %31, %35 : vector<8x128xf32>
    %37 = vector.broadcast %5 : vector<1x128xf32> to vector<8x128xf32>
    %38 = arith.mulf %36, %37 : vector<8x128xf32>
    %39 = vector.broadcast %6 : vector<1x128xf32> to vector<8x128xf32>
    %40 = arith.addf %38, %39 : vector<8x128xf32>
    %41 = arith.addf %18, %40 : vector<8x128xf32>
    %42 = vector.extract_strided_slice %41 {offsets = [0, 0], sizes = [8, 64], strides = [1, 1]} : vector<8x128xf32> to vector<8x64xf32>
    %43 = arith.negf %42 : vector<8x64xf32>
    %44 = math.exp %43 : vector<8x64xf32>
    %cst_24 = arith.constant 1.000000e+00 : f32
    %45 = vector.broadcast %cst_24 : f32 to vector<8x64xf32>
    %46 = arith.addf %45, %44 : vector<8x64xf32>
    %47 = arith.divf %45, %46 : vector<8x64xf32>
    %48 = vector.extract_strided_slice %41 {offsets = [0, 64], sizes = [8, 32], strides = [1, 1]} : vector<8x128xf32> to vector<8x32xf32>
    %49 = math.tanh %48 : vector<8x32xf32>
    %50 = vector.extract_strided_slice %41 {offsets = [0, 96], sizes = [8, 32], strides = [1, 1]} : vector<8x128xf32> to vector<8x32xf32>
    %51 = arith.negf %50 : vector<8x32xf32>
    %52 = math.exp %51 : vector<8x32xf32>
    %cst_25 = arith.constant 1.000000e+00 : f32
    %53 = vector.broadcast %cst_25 : f32 to vector<8x32xf32>
    %54 = arith.addf %53, %52 : vector<8x32xf32>
    %55 = arith.divf %53, %54 : vector<8x32xf32>
    %56 = vector.extract_strided_slice %47 {offsets = [0, 32], sizes = [8, 32], strides = [1, 1]} : vector<8x64xf32> to vector<8x32xf32>
    %57 = arith.mulf %56, %10 : vector<8x32xf32>
    %58 = vector.extract_strided_slice %47 {offsets = [0, 0], sizes = [8, 32], strides = [1, 1]} : vector<8x64xf32> to vector<8x32xf32>
    %59 = arith.mulf %58, %49 : vector<8x32xf32>
    %60 = arith.addf %57, %59 : vector<8x32xf32>
    %cst_26 = arith.constant dense<0.000000e+00> : vector<8xf32>
    %61 = vector.multi_reduction <add>, %60, %cst_26 [1] : vector<8x32xf32> to vector<8xf32>
    %62 = vector.shape_cast %61 : vector<8xf32> to vector<8x1xf32>
    %cst_27 = arith.constant 3.125000e-02 : f32
    %63 = vector.broadcast %cst_27 : f32 to vector<8x1xf32>
    %64 = arith.mulf %62, %63 : vector<8x1xf32>
    %65 = arith.mulf %60, %60 : vector<8x32xf32>
    %cst_28 = arith.constant dense<0.000000e+00> : vector<8xf32>
    %66 = vector.multi_reduction <add>, %65, %cst_28 [1] : vector<8x32xf32> to vector<8xf32>
    %67 = vector.shape_cast %66 : vector<8xf32> to vector<8x1xf32>
    %cst_29 = arith.constant 3.125000e-02 : f32
    %68 = vector.broadcast %cst_29 : f32 to vector<8x1xf32>
    %69 = arith.mulf %67, %68 : vector<8x1xf32>
    %70 = arith.mulf %64, %64 : vector<8x1xf32>
    %71 = arith.subf %69, %70 : vector<8x1xf32>
    %72 = vector.broadcast %64 : vector<8x1xf32> to vector<8x32xf32>
    %73 = arith.subf %60, %72 : vector<8x32xf32>
    %cst_30 = arith.constant 9.99999974E-6 : f32
    %74 = vector.broadcast %cst_30 : f32 to vector<8x1xf32>
    %75 = arith.addf %71, %74 : vector<8x1xf32>
    %76 = math.rsqrt %75 : vector<8x1xf32>
    %77 = vector.broadcast %76 : vector<8x1xf32> to vector<8x32xf32>
    %78 = arith.mulf %73, %77 : vector<8x32xf32>
    %79 = vector.broadcast %7 : vector<1x32xf32> to vector<8x32xf32>
    %80 = arith.mulf %78, %79 : vector<8x32xf32>
    %81 = vector.broadcast %8 : vector<1x32xf32> to vector<8x32xf32>
    %82 = arith.addf %80, %81 : vector<8x32xf32>
    %83 = math.tanh %82 : vector<8x32xf32>
    %84 = arith.mulf %55, %83 : vector<8x32xf32>
    %85 = arith.truncf %84 : vector<8x32xf32> to vector<8x32xbf16>
    %86 = arith.index_cast %c0_i32_16 : i32 to index
    %c0_31 = arith.constant 0 : index
    %c0_32 = arith.constant 0 : index
    %87 = vector.load %arg11[%86, %c0_31, %c0_32] : memref<8x8x32xbf16, #tpu.memory_space<vmem>>, vector<1x8x32xbf16>
    %88 = vector.shape_cast %87 : vector<1x8x32xbf16> to vector<8x32xbf16>
    %89 = vector.shape_cast %85 : vector<8x32xbf16> to vector<1x8x32xbf16>
    tpu.vector_store %arg11[%86, %c0_31, %c0_32], %89 {strides = array<i32>} : memref<8x8x32xbf16, #tpu.memory_space<vmem>>, vector<1x8x32xbf16>,
    %c1_i32 = arith.constant 1 : i32
    %90 = arith.truncf %84 : vector<8x32xf32> to vector<8x32xbf16>
    %cst_33 = arith.constant dense<0.000000e+00> : vector<8x128xf32>
    %91 = tpu.matmul %90, %3, %cst_33 {dimension_numbers = #tpu.dot_dimension_numbers<[1], [0], [0], [1], [0, 0, 1, 1], [], []>} : vector<8x32xbf16>, vector<32x128xbf16>, vector<8x128xf32> -> vector<8x128xf32>
    %92 = vector.broadcast %4 : vector<1x128xf32> to vector<8x128xf32>
    %93 = arith.addf %91, %92 : vector<8x128xf32>
    %94 = arith.index_cast %c1_i32 : i32 to index
    %c0_34 = arith.constant 0 : index
    %c0_35 = arith.constant 0 : index
    %95 = vector.load %arg2[%94, %c0_34, %c0_35] : memref<8x8x128xbf16, #tpu.memory_space<vmem>>, vector<1x8x128xbf16>
    %96 = vector.shape_cast %95 : vector<1x8x128xbf16> to vector<8x128xbf16>
    %97 = arith.extf %96 : vector<8x128xbf16> to vector<8x128xf32>
    %cst_36 = arith.constant dense<0.000000e+00> : vector<8xf32>
    %98 = vector.multi_reduction <add>, %93, %cst_36 [1] : vector<8x128xf32> to vector<8xf32>
    %99 = vector.shape_cast %98 : vector<8xf32> to vector<8x1xf32>
    %cst_37 = arith.constant 7.812500e-03 : f32
    %100 = vector.broadcast %cst_37 : f32 to vector<8x1xf32>
    %101 = arith.mulf %99, %100 : vector<8x1xf32>
    %102 = arith.mulf %93, %93 : vector<8x128xf32>
    %cst_38 = arith.constant dense<0.000000e+00> : vector<8xf32>
    %103 = vector.multi_reduction <add>, %102, %cst_38 [1] : vector<8x128xf32> to vector<8xf32>
    %104 = vector.shape_cast %103 : vector<8xf32> to vector<8x1xf32>
    %cst_39 = arith.constant 7.812500e-03 : f32
    %105 = vector.broadcast %cst_39 : f32 to vector<8x1xf32>
    %106 = arith.mulf %104, %105 : vector<8x1xf32>
    %107 = arith.mulf %101, %101 : vector<8x1xf32>
    %108 = arith.subf %106, %107 : vector<8x1xf32>
    %109 = vector.broadcast %101 : vector<8x1xf32> to vector<8x128xf32>
    %110 = arith.subf %93, %109 : vector<8x128xf32>
    %cst_40 = arith.constant 9.99999974E-6 : f32
    %111 = vector.broadcast %cst_40 : f32 to vector<8x1xf32>
    %112 = arith.addf %108, %111 : vector<8x1xf32>
    %113 = math.rsqrt %112 : vector<8x1xf32>
    %114 = vector.broadcast %113 : vector<8x1xf32> to vector<8x128xf32>
    %115 = arith.mulf %110, %114 : vector<8x128xf32>
    %116 = vector.broadcast %5 : vector<1x128xf32> to vector<8x128xf32>
    %117 = arith.mulf %115, %116 : vector<8x128xf32>
    %118 = vector.broadcast %6 : vector<1x128xf32> to vector<8x128xf32>
    %119 = arith.addf %117, %118 : vector<8x128xf32>
    %120 = arith.addf %97, %119 : vector<8x128xf32>
    %121 = vector.extract_strided_slice %120 {offsets = [0, 0], sizes = [8, 64], strides = [1, 1]} : vector<8x128xf32> to vector<8x64xf32>
    %122 = arith.negf %121 : vector<8x64xf32>
    %123 = math.exp %122 : vector<8x64xf32>
    %cst_41 = arith.constant 1.000000e+00 : f32
    %124 = vector.broadcast %cst_41 : f32 to vector<8x64xf32>
    %125 = arith.addf %124, %123 : vector<8x64xf32>
    %126 = arith.divf %124, %125 : vector<8x64xf32>
    %127 = vector.extract_strided_slice %120 {offsets = [0, 64], sizes = [8, 32], strides = [1, 1]} : vector<8x128xf32> to vector<8x32xf32>
    %128 = math.tanh %127 : vector<8x32xf32>
    %129 = vector.extract_strided_slice %120 {offsets = [0, 96], sizes = [8, 32], strides = [1, 1]} : vector<8x128xf32> to vector<8x32xf32>
    %130 = arith.negf %129 : vector<8x32xf32>
    %131 = math.exp %130 : vector<8x32xf32>
    %cst_42 = arith.constant 1.000000e+00 : f32
    %132 = vector.broadcast %cst_42 : f32 to vector<8x32xf32>
    %133 = arith.addf %132, %131 : vector<8x32xf32>
    %134 = arith.divf %132, %133 : vector<8x32xf32>
    %135 = vector.extract_strided_slice %126 {offsets = [0, 32], sizes = [8, 32], strides = [1, 1]} : vector<8x64xf32> to vector<8x32xf32>
    %136 = arith.mulf %135, %60 : vector<8x32xf32>
    %137 = vector.extract_strided_slice %126 {offsets = [0, 0], sizes = [8, 32], strides = [1, 1]} : vector<8x64xf32> to vector<8x32xf32>
    %138 = arith.mulf %137, %128 : vector<8x32xf32>
    %139 = arith.addf %136, %138 : vector<8x32xf32>
    %cst_43 = arith.constant dense<0.000000e+00> : vector<8xf32>
    %140 = vector.multi_reduction <add>, %139, %cst_43 [1] : vector<8x32xf32> to vector<8xf32>
    %141 = vector.shape_cast %140 : vector<8xf32> to vector<8x1xf32>
    %cst_44 = arith.constant 3.125000e-02 : f32
    %142 = vector.broadcast %cst_44 : f32 to vector<8x1xf32>
    %143 = arith.mulf %141, %142 : vector<8x1xf32>
    %144 = arith.mulf %139, %139 : vector<8x32xf32>
    %cst_45 = arith.constant dense<0.000000e+00> : vector<8xf32>
    %145 = vector.multi_reduction <add>, %144, %cst_45 [1] : vector<8x32xf32> to vector<8xf32>
    %146 = vector.shape_cast %145 : vector<8xf32> to vector<8x1xf32>
    %cst_46 = arith.constant 3.125000e-02 : f32
    %147 = vector.broadcast %cst_46 : f32 to vector<8x1xf32>
    %148 = arith.mulf %146, %147 : vector<8x1xf32>
    %149 = arith.mulf %143, %143 : vector<8x1xf32>
    %150 = arith.subf %148, %149 : vector<8x1xf32>
    %151 = vector.broadcast %143 : vector<8x1xf32> to vector<8x32xf32>
    %152 = arith.subf %139, %151 : vector<8x32xf32>
    %cst_47 = arith.constant 9.99999974E-6 : f32
    %153 = vector.broadcast %cst_47 : f32 to vector<8x1xf32>
    %154 = arith.addf %150, %153 : vector<8x1xf32>
    %155 = math.rsqrt %154 : vector<8x1xf32>
    %156 = vector.broadcast %155 : vector<8x1xf32> to vector<8x32xf32>
    %157 = arith.mulf %152, %156 : vector<8x32xf32>
    %158 = vector.broadcast %7 : vector<1x32xf32> to vector<8x32xf32>
    %159 = arith.mulf %157, %158 : vector<8x32xf32>
    %160 = vector.broadcast %8 : vector<1x32xf32> to vector<8x32xf32>
    %161 = arith.addf %159, %160 : vector<8x32xf32>
    %162 = math.tanh %161 : vector<8x32xf32>
    %163 = arith.mulf %134, %162 : vector<8x32xf32>
    %164 = arith.truncf %163 : vector<8x32xf32> to vector<8x32xbf16>
    %165 = arith.index_cast %c1_i32 : i32 to index
    %c0_48 = arith.constant 0 : index
    %c0_49 = arith.constant 0 : index
    %166 = vector.load %arg11[%165, %c0_48, %c0_49] : memref<8x8x32xbf16, #tpu.memory_space<vmem>>, vector<1x8x32xbf16>
    %167 = vector.shape_cast %166 : vector<1x8x32xbf16> to vector<8x32xbf16>
    %168 = vector.shape_cast %164 : vector<8x32xbf16> to vector<1x8x32xbf16>
    tpu.vector_store %arg11[%165, %c0_48, %c0_49], %168 {strides = array<i32>} : memref<8x8x32xbf16, #tpu.memory_space<vmem>>, vector<1x8x32xbf16>,
    %c2_i32 = arith.constant 2 : i32
    %169 = arith.truncf %163 : vector<8x32xf32> to vector<8x32xbf16>
    %cst_50 = arith.constant dense<0.000000e+00> : vector<8x128xf32>
    %170 = tpu.matmul %169, %3, %cst_50 {dimension_numbers = #tpu.dot_dimension_numbers<[1], [0], [0], [1], [0, 0, 1, 1], [], []>} : vector<8x32xbf16>, vector<32x128xbf16>, vector<8x128xf32> -> vector<8x128xf32>
    %171 = vector.broadcast %4 : vector<1x128xf32> to vector<8x128xf32>
    %172 = arith.addf %170, %171 : vector<8x128xf32>
    %173 = arith.index_cast %c2_i32 : i32 to index
    %c0_51 = arith.constant 0 : index
    %c0_52 = arith.constant 0 : index
    %174 = vector.load %arg2[%173, %c0_51, %c0_52] : memref<8x8x128xbf16, #tpu.memory_space<vmem>>, vector<1x8x128xbf16>
    %175 = vector.shape_cast %174 : vector<1x8x128xbf16> to vector<8x128xbf16>
    %176 = arith.extf %175 : vector<8x128xbf16> to vector<8x128xf32>
    %cst_53 = arith.constant dense<0.000000e+00> : vector<8xf32>
    %177 = vector.multi_reduction <add>, %172, %cst_53 [1] : vector<8x128xf32> to vector<8xf32>
    %178 = vector.shape_cast %177 : vector<8xf32> to vector<8x1xf32>
    %cst_54 = arith.constant 7.812500e-03 : f32
    %179 = vector.broadcast %cst_54 : f32 to vector<8x1xf32>
    %180 = arith.mulf %178, %179 : vector<8x1xf32>
    %181 = arith.mulf %172, %172 : vector<8x128xf32>
    %cst_55 = arith.constant dense<0.000000e+00> : vector<8xf32>
    %182 = vector.multi_reduction <add>, %181, %cst_55 [1] : vector<8x128xf32> to vector<8xf32>
    %183 = vector.shape_cast %182 : vector<8xf32> to vector<8x1xf32>
    %cst_56 = arith.constant 7.812500e-03 : f32
    %184 = vector.broadcast %cst_56 : f32 to vector<8x1xf32>
    %185 = arith.mulf %183, %184 : vector<8x1xf32>
    %186 = arith.mulf %180, %180 : vector<8x1xf32>
    %187 = arith.subf %185, %186 : vector<8x1xf32>
    %188 = vector.broadcast %180 : vector<8x1xf32> to vector<8x128xf32>
    %189 = arith.subf %172, %188 : vector<8x128xf32>
    %cst_57 = arith.constant 9.99999974E-6 : f32
    %190 = vector.broadcast %cst_57 : f32 to vector<8x1xf32>
    %191 = arith.addf %187, %190 : vector<8x1xf32>
    %192 = math.rsqrt %191 : vector<8x1xf32>
    %193 = vector.broadcast %192 : vector<8x1xf32> to vector<8x128xf32>
    %194 = arith.mulf %189, %193 : vector<8x128xf32>
    %195 = vector.broadcast %5 : vector<1x128xf32> to vector<8x128xf32>
    %196 = arith.mulf %194, %195 : vector<8x128xf32>
    %197 = vector.broadcast %6 : vector<1x128xf32> to vector<8x128xf32>
    %198 = arith.addf %196, %197 : vector<8x128xf32>
    %199 = arith.addf %176, %198 : vector<8x128xf32>
    %200 = vector.extract_strided_slice %199 {offsets = [0, 0], sizes = [8, 64], strides = [1, 1]} : vector<8x128xf32> to vector<8x64xf32>
    %201 = arith.negf %200 : vector<8x64xf32>
    %202 = math.exp %201 : vector<8x64xf32>
    %cst_58 = arith.constant 1.000000e+00 : f32
    %203 = vector.broadcast %cst_58 : f32 to vector<8x64xf32>
    %204 = arith.addf %203, %202 : vector<8x64xf32>
    %205 = arith.divf %203, %204 : vector<8x64xf32>
    %206 = vector.extract_strided_slice %199 {offsets = [0, 64], sizes = [8, 32], strides = [1, 1]} : vector<8x128xf32> to vector<8x32xf32>
    %207 = math.tanh %206 : vector<8x32xf32>
    %208 = vector.extract_strided_slice %199 {offsets = [0, 96], sizes = [8, 32], strides = [1, 1]} : vector<8x128xf32> to vector<8x32xf32>
    %209 = arith.negf %208 : vector<8x32xf32>
    %210 = math.exp %209 : vector<8x32xf32>
    %cst_59 = arith.constant 1.000000e+00 : f32
    %211 = vector.broadcast %cst_59 : f32 to vector<8x32xf32>
    %212 = arith.addf %211, %210 : vector<8x32xf32>
    %213 = arith.divf %211, %212 : vector<8x32xf32>
    %214 = vector.extract_strided_slice %205 {offsets = [0, 32], sizes = [8, 32], strides = [1, 1]} : vector<8x64xf32> to vector<8x32xf32>
    %215 = arith.mulf %214, %139 : vector<8x32xf32>
    %216 = vector.extract_strided_slice %205 {offsets = [0, 0], sizes = [8, 32], strides = [1, 1]} : vector<8x64xf32> to vector<8x32xf32>
    %217 = arith.mulf %216, %207 : vector<8x32xf32>
    %218 = arith.addf %215, %217 : vector<8x32xf32>
    %cst_60 = arith.constant dense<0.000000e+00> : vector<8xf32>
    %219 = vector.multi_reduction <add>, %218, %cst_60 [1] : vector<8x32xf32> to vector<8xf32>
    %220 = vector.shape_cast %219 : vector<8xf32> to vector<8x1xf32>
    %cst_61 = arith.constant 3.125000e-02 : f32
    %221 = vector.broadcast %cst_61 : f32 to vector<8x1xf32>
    %222 = arith.mulf %220, %221 : vector<8x1xf32>
    %223 = arith.mulf %218, %218 : vector<8x32xf32>
    %cst_62 = arith.constant dense<0.000000e+00> : vector<8xf32>
    %224 = vector.multi_reduction <add>, %223, %cst_62 [1] : vector<8x32xf32> to vector<8xf32>
    %225 = vector.shape_cast %224 : vector<8xf32> to vector<8x1xf32>
    %cst_63 = arith.constant 3.125000e-02 : f32
    %226 = vector.broadcast %cst_63 : f32 to vector<8x1xf32>
    %227 = arith.mulf %225, %226 : vector<8x1xf32>
    %228 = arith.mulf %222, %222 : vector<8x1xf32>
    %229 = arith.subf %227, %228 : vector<8x1xf32>
    %230 = vector.broadcast %222 : vector<8x1xf32> to vector<8x32xf32>
    %231 = arith.subf %218, %230 : vector<8x32xf32>
    %cst_64 = arith.constant 9.99999974E-6 : f32
    %232 = vector.broadcast %cst_64 : f32 to vector<8x1xf32>
    %233 = arith.addf %229, %232 : vector<8x1xf32>
    %234 = math.rsqrt %233 : vector<8x1xf32>
    %235 = vector.broadcast %234 : vector<8x1xf32> to vector<8x32xf32>
    %236 = arith.mulf %231, %235 : vector<8x32xf32>
    %237 = vector.broadcast %7 : vector<1x32xf32> to vector<8x32xf32>
    %238 = arith.mulf %236, %237 : vector<8x32xf32>
    %239 = vector.broadcast %8 : vector<1x32xf32> to vector<8x32xf32>
    %240 = arith.addf %238, %239 : vector<8x32xf32>
    %241 = math.tanh %240 : vector<8x32xf32>
    %242 = arith.mulf %213, %241 : vector<8x32xf32>
    %243 = arith.truncf %242 : vector<8x32xf32> to vector<8x32xbf16>
    %244 = arith.index_cast %c2_i32 : i32 to index
    %c0_65 = arith.constant 0 : index
    %c0_66 = arith.constant 0 : index
    %245 = vector.load %arg11[%244, %c0_65, %c0_66] : memref<8x8x32xbf16, #tpu.memory_space<vmem>>, vector<1x8x32xbf16>
    %246 = vector.shape_cast %245 : vector<1x8x32xbf16> to vector<8x32xbf16>
    %247 = vector.shape_cast %243 : vector<8x32xbf16> to vector<1x8x32xbf16>
    tpu.vector_store %arg11[%244, %c0_65, %c0_66], %247 {strides = array<i32>} : memref<8x8x32xbf16, #tpu.memory_space<vmem>>, vector<1x8x32xbf16>,
    %c3_i32 = arith.constant 3 : i32
    %248 = arith.truncf %242 : vector<8x32xf32> to vector<8x32xbf16>
    %cst_67 = arith.constant dense<0.000000e+00> : vector<8x128xf32>
    %249 = tpu.matmul %248, %3, %cst_67 {dimension_numbers = #tpu.dot_dimension_numbers<[1], [0], [0], [1], [0, 0, 1, 1], [], []>} : vector<8x32xbf16>, vector<32x128xbf16>, vector<8x128xf32> -> vector<8x128xf32>
    %250 = vector.broadcast %4 : vector<1x128xf32> to vector<8x128xf32>
    %251 = arith.addf %249, %250 : vector<8x128xf32>
    %252 = arith.index_cast %c3_i32 : i32 to index
    %c0_68 = arith.constant 0 : index
    %c0_69 = arith.constant 0 : index
    %253 = vector.load %arg2[%252, %c0_68, %c0_69] : memref<8x8x128xbf16, #tpu.memory_space<vmem>>, vector<1x8x128xbf16>
    %254 = vector.shape_cast %253 : vector<1x8x128xbf16> to vector<8x128xbf16>
    %255 = arith.extf %254 : vector<8x128xbf16> to vector<8x128xf32>
    %cst_70 = arith.constant dense<0.000000e+00> : vector<8xf32>
    %256 = vector.multi_reduction <add>, %251, %cst_70 [1] : vector<8x128xf32> to vector<8xf32>
    %257 = vector.shape_cast %256 : vector<8xf32> to vector<8x1xf32>
    %cst_71 = arith.constant 7.812500e-03 : f32
    %258 = vector.broadcast %cst_71 : f32 to vector<8x1xf32>
    %259 = arith.mulf %257, %258 : vector<8x1xf32>
    %260 = arith.mulf %251, %251 : vector<8x128xf32>
    %cst_72 = arith.constant dense<0.000000e+00> : vector<8xf32>
    %261 = vector.multi_reduction <add>, %260, %cst_72 [1] : vector<8x128xf32> to vector<8xf32>
    %262 = vector.shape_cast %261 : vector<8xf32> to vector<8x1xf32>
    %cst_73 = arith.constant 7.812500e-03 : f32
    %263 = vector.broadcast %cst_73 : f32 to vector<8x1xf32>
    %264 = arith.mulf %262, %263 : vector<8x1xf32>
    %265 = arith.mulf %259, %259 : vector<8x1xf32>
    %266 = arith.subf %264, %265 : vector<8x1xf32>
    %267 = vector.broadcast %259 : vector<8x1xf32> to vector<8x128xf32>
    %268 = arith.subf %251, %267 : vector<8x128xf32>
    %cst_74 = arith.constant 9.99999974E-6 : f32
    %269 = vector.broadcast %cst_74 : f32 to vector<8x1xf32>
    %270 = arith.addf %266, %269 : vector<8x1xf32>
    %271 = math.rsqrt %270 : vector<8x1xf32>
    %272 = vector.broadcast %271 : vector<8x1xf32> to vector<8x128xf32>
    %273 = arith.mulf %268, %272 : vector<8x128xf32>
    %274 = vector.broadcast %5 : vector<1x128xf32> to vector<8x128xf32>
    %275 = arith.mulf %273, %274 : vector<8x128xf32>
    %276 = vector.broadcast %6 : vector<1x128xf32> to vector<8x128xf32>
    %277 = arith.addf %275, %276 : vector<8x128xf32>
    %278 = arith.addf %255, %277 : vector<8x128xf32>
    %279 = vector.extract_strided_slice %278 {offsets = [0, 0], sizes = [8, 64], strides = [1, 1]} : vector<8x128xf32> to vector<8x64xf32>
    %280 = arith.negf %279 : vector<8x64xf32>
    %281 = math.exp %280 : vector<8x64xf32>
    %cst_75 = arith.constant 1.000000e+00 : f32
    %282 = vector.broadcast %cst_75 : f32 to vector<8x64xf32>
    %283 = arith.addf %282, %281 : vector<8x64xf32>
    %284 = arith.divf %282, %283 : vector<8x64xf32>
    %285 = vector.extract_strided_slice %278 {offsets = [0, 64], sizes = [8, 32], strides = [1, 1]} : vector<8x128xf32> to vector<8x32xf32>
    %286 = math.tanh %285 : vector<8x32xf32>
    %287 = vector.extract_strided_slice %278 {offsets = [0, 96], sizes = [8, 32], strides = [1, 1]} : vector<8x128xf32> to vector<8x32xf32>
    %288 = arith.negf %287 : vector<8x32xf32>
    %289 = math.exp %288 : vector<8x32xf32>
    %cst_76 = arith.constant 1.000000e+00 : f32
    %290 = vector.broadcast %cst_76 : f32 to vector<8x32xf32>
    %291 = arith.addf %290, %289 : vector<8x32xf32>
    %292 = arith.divf %290, %291 : vector<8x32xf32>
    %293 = vector.extract_strided_slice %284 {offsets = [0, 32], sizes = [8, 32], strides = [1, 1]} : vector<8x64xf32> to vector<8x32xf32>
    %294 = arith.mulf %293, %218 : vector<8x32xf32>
    %295 = vector.extract_strided_slice %284 {offsets = [0, 0], sizes = [8, 32], strides = [1, 1]} : vector<8x64xf32> to vector<8x32xf32>
    %296 = arith.mulf %295, %286 : vector<8x32xf32>
    %297 = arith.addf %294, %296 : vector<8x32xf32>
    %cst_77 = arith.constant dense<0.000000e+00> : vector<8xf32>
    %298 = vector.multi_reduction <add>, %297, %cst_77 [1] : vector<8x32xf32> to vector<8xf32>
    %299 = vector.shape_cast %298 : vector<8xf32> to vector<8x1xf32>
    %cst_78 = arith.constant 3.125000e-02 : f32
    %300 = vector.broadcast %cst_78 : f32 to vector<8x1xf32>
    %301 = arith.mulf %299, %300 : vector<8x1xf32>
    %302 = arith.mulf %297, %297 : vector<8x32xf32>
    %cst_79 = arith.constant dense<0.000000e+00> : vector<8xf32>
    %303 = vector.multi_reduction <add>, %302, %cst_79 [1] : vector<8x32xf32> to vector<8xf32>
    %304 = vector.shape_cast %303 : vector<8xf32> to vector<8x1xf32>
    %cst_80 = arith.constant 3.125000e-02 : f32
    %305 = vector.broadcast %cst_80 : f32 to vector<8x1xf32>
    %306 = arith.mulf %304, %305 : vector<8x1xf32>
    %307 = arith.mulf %301, %301 : vector<8x1xf32>
    %308 = arith.subf %306, %307 : vector<8x1xf32>
    %309 = vector.broadcast %301 : vector<8x1xf32> to vector<8x32xf32>
    %310 = arith.subf %297, %309 : vector<8x32xf32>
    %cst_81 = arith.constant 9.99999974E-6 : f32
    %311 = vector.broadcast %cst_81 : f32 to vector<8x1xf32>
    %312 = arith.addf %308, %311 : vector<8x1xf32>
    %313 = math.rsqrt %312 : vector<8x1xf32>
    %314 = vector.broadcast %313 : vector<8x1xf32> to vector<8x32xf32>
    %315 = arith.mulf %310, %314 : vector<8x32xf32>
    %316 = vector.broadcast %7 : vector<1x32xf32> to vector<8x32xf32>
    %317 = arith.mulf %315, %316 : vector<8x32xf32>
    %318 = vector.broadcast %8 : vector<1x32xf32> to vector<8x32xf32>
    %319 = arith.addf %317, %318 : vector<8x32xf32>
    %320 = math.tanh %319 : vector<8x32xf32>
    %321 = arith.mulf %292, %320 : vector<8x32xf32>
    %322 = arith.truncf %321 : vector<8x32xf32> to vector<8x32xbf16>
    %323 = arith.index_cast %c3_i32 : i32 to index
    %c0_82 = arith.constant 0 : index
    %c0_83 = arith.constant 0 : index
    %324 = vector.load %arg11[%323, %c0_82, %c0_83] : memref<8x8x32xbf16, #tpu.memory_space<vmem>>, vector<1x8x32xbf16>
    %325 = vector.shape_cast %324 : vector<1x8x32xbf16> to vector<8x32xbf16>
    %326 = vector.shape_cast %322 : vector<8x32xbf16> to vector<1x8x32xbf16>
    tpu.vector_store %arg11[%323, %c0_82, %c0_83], %326 {strides = array<i32>} : memref<8x8x32xbf16, #tpu.memory_space<vmem>>, vector<1x8x32xbf16>,
    %c4_i32 = arith.constant 4 : i32
    %327 = arith.truncf %321 : vector<8x32xf32> to vector<8x32xbf16>
    %cst_84 = arith.constant dense<0.000000e+00> : vector<8x128xf32>
    %328 = tpu.matmul %327, %3, %cst_84 {dimension_numbers = #tpu.dot_dimension_numbers<[1], [0], [0], [1], [0, 0, 1, 1], [], []>} : vector<8x32xbf16>, vector<32x128xbf16>, vector<8x128xf32> -> vector<8x128xf32>
    %329 = vector.broadcast %4 : vector<1x128xf32> to vector<8x128xf32>
    %330 = arith.addf %328, %329 : vector<8x128xf32>
    %331 = arith.index_cast %c4_i32 : i32 to index
    %c0_85 = arith.constant 0 : index
    %c0_86 = arith.constant 0 : index
    %332 = vector.load %arg2[%331, %c0_85, %c0_86] : memref<8x8x128xbf16, #tpu.memory_space<vmem>>, vector<1x8x128xbf16>
    %333 = vector.shape_cast %332 : vector<1x8x128xbf16> to vector<8x128xbf16>
    %334 = arith.extf %333 : vector<8x128xbf16> to vector<8x128xf32>
    %cst_87 = arith.constant dense<0.000000e+00> : vector<8xf32>
    %335 = vector.multi_reduction <add>, %330, %cst_87 [1] : vector<8x128xf32> to vector<8xf32>
    %336 = vector.shape_cast %335 : vector<8xf32> to vector<8x1xf32>
    %cst_88 = arith.constant 7.812500e-03 : f32
    %337 = vector.broadcast %cst_88 : f32 to vector<8x1xf32>
    %338 = arith.mulf %336, %337 : vector<8x1xf32>
    %339 = arith.mulf %330, %330 : vector<8x128xf32>
    %cst_89 = arith.constant dense<0.000000e+00> : vector<8xf32>
    %340 = vector.multi_reduction <add>, %339, %cst_89 [1] : vector<8x128xf32> to vector<8xf32>
    %341 = vector.shape_cast %340 : vector<8xf32> to vector<8x1xf32>
    %cst_90 = arith.constant 7.812500e-03 : f32
    %342 = vector.broadcast %cst_90 : f32 to vector<8x1xf32>
    %343 = arith.mulf %341, %342 : vector<8x1xf32>
    %344 = arith.mulf %338, %338 : vector<8x1xf32>
    %345 = arith.subf %343, %344 : vector<8x1xf32>
    %346 = vector.broadcast %338 : vector<8x1xf32> to vector<8x128xf32>
    %347 = arith.subf %330, %346 : vector<8x128xf32>
    %cst_91 = arith.constant 9.99999974E-6 : f32
    %348 = vector.broadcast %cst_91 : f32 to vector<8x1xf32>
    %349 = arith.addf %345, %348 : vector<8x1xf32>
    %350 = math.rsqrt %349 : vector<8x1xf32>
    %351 = vector.broadcast %350 : vector<8x1xf32> to vector<8x128xf32>
    %352 = arith.mulf %347, %351 : vector<8x128xf32>
    %353 = vector.broadcast %5 : vector<1x128xf32> to vector<8x128xf32>
    %354 = arith.mulf %352, %353 : vector<8x128xf32>
    %355 = vector.broadcast %6 : vector<1x128xf32> to vector<8x128xf32>
    %356 = arith.addf %354, %355 : vector<8x128xf32>
    %357 = arith.addf %334, %356 : vector<8x128xf32>
    %358 = vector.extract_strided_slice %357 {offsets = [0, 0], sizes = [8, 64], strides = [1, 1]} : vector<8x128xf32> to vector<8x64xf32>
    %359 = arith.negf %358 : vector<8x64xf32>
    %360 = math.exp %359 : vector<8x64xf32>
    %cst_92 = arith.constant 1.000000e+00 : f32
    %361 = vector.broadcast %cst_92 : f32 to vector<8x64xf32>
    %362 = arith.addf %361, %360 : vector<8x64xf32>
    %363 = arith.divf %361, %362 : vector<8x64xf32>
    %364 = vector.extract_strided_slice %357 {offsets = [0, 64], sizes = [8, 32], strides = [1, 1]} : vector<8x128xf32> to vector<8x32xf32>
    %365 = math.tanh %364 : vector<8x32xf32>
    %366 = vector.extract_strided_slice %357 {offsets = [0, 96], sizes = [8, 32], strides = [1, 1]} : vector<8x128xf32> to vector<8x32xf32>
    %367 = arith.negf %366 : vector<8x32xf32>
    %368 = math.exp %367 : vector<8x32xf32>
    %cst_93 = arith.constant 1.000000e+00 : f32
    %369 = vector.broadcast %cst_93 : f32 to vector<8x32xf32>
    %370 = arith.addf %369, %368 : vector<8x32xf32>
    %371 = arith.divf %369, %370 : vector<8x32xf32>
    %372 = vector.extract_strided_slice %363 {offsets = [0, 32], sizes = [8, 32], strides = [1, 1]} : vector<8x64xf32> to vector<8x32xf32>
    %373 = arith.mulf %372, %297 : vector<8x32xf32>
    %374 = vector.extract_strided_slice %363 {offsets = [0, 0], sizes = [8, 32], strides = [1, 1]} : vector<8x64xf32> to vector<8x32xf32>
    %375 = arith.mulf %374, %365 : vector<8x32xf32>
    %376 = arith.addf %373, %375 : vector<8x32xf32>
    %cst_94 = arith.constant dense<0.000000e+00> : vector<8xf32>
    %377 = vector.multi_reduction <add>, %376, %cst_94 [1] : vector<8x32xf32> to vector<8xf32>
    %378 = vector.shape_cast %377 : vector<8xf32> to vector<8x1xf32>
    %cst_95 = arith.constant 3.125000e-02 : f32
    %379 = vector.broadcast %cst_95 : f32 to vector<8x1xf32>
    %380 = arith.mulf %378, %379 : vector<8x1xf32>
    %381 = arith.mulf %376, %376 : vector<8x32xf32>
    %cst_96 = arith.constant dense<0.000000e+00> : vector<8xf32>
    %382 = vector.multi_reduction <add>, %381, %cst_96 [1] : vector<8x32xf32> to vector<8xf32>
    %383 = vector.shape_cast %382 : vector<8xf32> to vector<8x1xf32>
    %cst_97 = arith.constant 3.125000e-02 : f32
    %384 = vector.broadcast %cst_97 : f32 to vector<8x1xf32>
    %385 = arith.mulf %383, %384 : vector<8x1xf32>
    %386 = arith.mulf %380, %380 : vector<8x1xf32>
    %387 = arith.subf %385, %386 : vector<8x1xf32>
    %388 = vector.broadcast %380 : vector<8x1xf32> to vector<8x32xf32>
    %389 = arith.subf %376, %388 : vector<8x32xf32>
    %cst_98 = arith.constant 9.99999974E-6 : f32
    %390 = vector.broadcast %cst_98 : f32 to vector<8x1xf32>
    %391 = arith.addf %387, %390 : vector<8x1xf32>
    %392 = math.rsqrt %391 : vector<8x1xf32>
    %393 = vector.broadcast %392 : vector<8x1xf32> to vector<8x32xf32>
    %394 = arith.mulf %389, %393 : vector<8x32xf32>
    %395 = vector.broadcast %7 : vector<1x32xf32> to vector<8x32xf32>
    %396 = arith.mulf %394, %395 : vector<8x32xf32>
    %397 = vector.broadcast %8 : vector<1x32xf32> to vector<8x32xf32>
    %398 = arith.addf %396, %397 : vector<8x32xf32>
    %399 = math.tanh %398 : vector<8x32xf32>
    %400 = arith.mulf %371, %399 : vector<8x32xf32>
    %401 = arith.truncf %400 : vector<8x32xf32> to vector<8x32xbf16>
    %402 = arith.index_cast %c4_i32 : i32 to index
    %c0_99 = arith.constant 0 : index
    %c0_100 = arith.constant 0 : index
    %403 = vector.load %arg11[%402, %c0_99, %c0_100] : memref<8x8x32xbf16, #tpu.memory_space<vmem>>, vector<1x8x32xbf16>
    %404 = vector.shape_cast %403 : vector<1x8x32xbf16> to vector<8x32xbf16>
    %405 = vector.shape_cast %401 : vector<8x32xbf16> to vector<1x8x32xbf16>
    tpu.vector_store %arg11[%402, %c0_99, %c0_100], %405 {strides = array<i32>} : memref<8x8x32xbf16, #tpu.memory_space<vmem>>, vector<1x8x32xbf16>,
    %c5_i32 = arith.constant 5 : i32
    %406 = arith.truncf %400 : vector<8x32xf32> to vector<8x32xbf16>
    %cst_101 = arith.constant dense<0.000000e+00> : vector<8x128xf32>
    %407 = tpu.matmul %406, %3, %cst_101 {dimension_numbers = #tpu.dot_dimension_numbers<[1], [0], [0], [1], [0, 0, 1, 1], [], []>} : vector<8x32xbf16>, vector<32x128xbf16>, vector<8x128xf32> -> vector<8x128xf32>
    %408 = vector.broadcast %4 : vector<1x128xf32> to vector<8x128xf32>
    %409 = arith.addf %407, %408 : vector<8x128xf32>
    %410 = arith.index_cast %c5_i32 : i32 to index
    %c0_102 = arith.constant 0 : index
    %c0_103 = arith.constant 0 : index
    %411 = vector.load %arg2[%410, %c0_102, %c0_103] : memref<8x8x128xbf16, #tpu.memory_space<vmem>>, vector<1x8x128xbf16>
    %412 = vector.shape_cast %411 : vector<1x8x128xbf16> to vector<8x128xbf16>
    %413 = arith.extf %412 : vector<8x128xbf16> to vector<8x128xf32>
    %cst_104 = arith.constant dense<0.000000e+00> : vector<8xf32>
    %414 = vector.multi_reduction <add>, %409, %cst_104 [1] : vector<8x128xf32> to vector<8xf32>
    %415 = vector.shape_cast %414 : vector<8xf32> to vector<8x1xf32>
    %cst_105 = arith.constant 7.812500e-03 : f32
    %416 = vector.broadcast %cst_105 : f32 to vector<8x1xf32>
    %417 = arith.mulf %415, %416 : vector<8x1xf32>
    %418 = arith.mulf %409, %409 : vector<8x128xf32>
    %cst_106 = arith.constant dense<0.000000e+00> : vector<8xf32>
    %419 = vector.multi_reduction <add>, %418, %cst_106 [1] : vector<8x128xf32> to vector<8xf32>
    %420 = vector.shape_cast %419 : vector<8xf32> to vector<8x1xf32>
    %cst_107 = arith.constant 7.812500e-03 : f32
    %421 = vector.broadcast %cst_107 : f32 to vector<8x1xf32>
    %422 = arith.mulf %420, %421 : vector<8x1xf32>
    %423 = arith.mulf %417, %417 : vector<8x1xf32>
    %424 = arith.subf %422, %423 : vector<8x1xf32>
    %425 = vector.broadcast %417 : vector<8x1xf32> to vector<8x128xf32>
    %426 = arith.subf %409, %425 : vector<8x128xf32>
    %cst_108 = arith.constant 9.99999974E-6 : f32
    %427 = vector.broadcast %cst_108 : f32 to vector<8x1xf32>
    %428 = arith.addf %424, %427 : vector<8x1xf32>
    %429 = math.rsqrt %428 : vector<8x1xf32>
    %430 = vector.broadcast %429 : vector<8x1xf32> to vector<8x128xf32>
    %431 = arith.mulf %426, %430 : vector<8x128xf32>
    %432 = vector.broadcast %5 : vector<1x128xf32> to vector<8x128xf32>
    %433 = arith.mulf %431, %432 : vector<8x128xf32>
    %434 = vector.broadcast %6 : vector<1x128xf32> to vector<8x128xf32>
    %435 = arith.addf %433, %434 : vector<8x128xf32>
    %436 = arith.addf %413, %435 : vector<8x128xf32>
    %437 = vector.extract_strided_slice %436 {offsets = [0, 0], sizes = [8, 64], strides = [1, 1]} : vector<8x128xf32> to vector<8x64xf32>
    %438 = arith.negf %437 : vector<8x64xf32>
    %439 = math.exp %438 : vector<8x64xf32>
    %cst_109 = arith.constant 1.000000e+00 : f32
    %440 = vector.broadcast %cst_109 : f32 to vector<8x64xf32>
    %441 = arith.addf %440, %439 : vector<8x64xf32>
    %442 = arith.divf %440, %441 : vector<8x64xf32>
    %443 = vector.extract_strided_slice %436 {offsets = [0, 64], sizes = [8, 32], strides = [1, 1]} : vector<8x128xf32> to vector<8x32xf32>
    %444 = math.tanh %443 : vector<8x32xf32>
    %445 = vector.extract_strided_slice %436 {offsets = [0, 96], sizes = [8, 32], strides = [1, 1]} : vector<8x128xf32> to vector<8x32xf32>
    %446 = arith.negf %445 : vector<8x32xf32>
    %447 = math.exp %446 : vector<8x32xf32>
    %cst_110 = arith.constant 1.000000e+00 : f32
    %448 = vector.broadcast %cst_110 : f32 to vector<8x32xf32>
    %449 = arith.addf %448, %447 : vector<8x32xf32>
    %450 = arith.divf %448, %449 : vector<8x32xf32>
    %451 = vector.extract_strided_slice %442 {offsets = [0, 32], sizes = [8, 32], strides = [1, 1]} : vector<8x64xf32> to vector<8x32xf32>
    %452 = arith.mulf %451, %376 : vector<8x32xf32>
    %453 = vector.extract_strided_slice %442 {offsets = [0, 0], sizes = [8, 32], strides = [1, 1]} : vector<8x64xf32> to vector<8x32xf32>
    %454 = arith.mulf %453, %444 : vector<8x32xf32>
    %455 = arith.addf %452, %454 : vector<8x32xf32>
    %cst_111 = arith.constant dense<0.000000e+00> : vector<8xf32>
    %456 = vector.multi_reduction <add>, %455, %cst_111 [1] : vector<8x32xf32> to vector<8xf32>
    %457 = vector.shape_cast %456 : vector<8xf32> to vector<8x1xf32>
    %cst_112 = arith.constant 3.125000e-02 : f32
    %458 = vector.broadcast %cst_112 : f32 to vector<8x1xf32>
    %459 = arith.mulf %457, %458 : vector<8x1xf32>
    %460 = arith.mulf %455, %455 : vector<8x32xf32>
    %cst_113 = arith.constant dense<0.000000e+00> : vector<8xf32>
    %461 = vector.multi_reduction <add>, %460, %cst_113 [1] : vector<8x32xf32> to vector<8xf32>
    %462 = vector.shape_cast %461 : vector<8xf32> to vector<8x1xf32>
    %cst_114 = arith.constant 3.125000e-02 : f32
    %463 = vector.broadcast %cst_114 : f32 to vector<8x1xf32>
    %464 = arith.mulf %462, %463 : vector<8x1xf32>
    %465 = arith.mulf %459, %459 : vector<8x1xf32>
    %466 = arith.subf %464, %465 : vector<8x1xf32>
    %467 = vector.broadcast %459 : vector<8x1xf32> to vector<8x32xf32>
    %468 = arith.subf %455, %467 : vector<8x32xf32>
    %cst_115 = arith.constant 9.99999974E-6 : f32
    %469 = vector.broadcast %cst_115 : f32 to vector<8x1xf32>
    %470 = arith.addf %466, %469 : vector<8x1xf32>
    %471 = math.rsqrt %470 : vector<8x1xf32>
    %472 = vector.broadcast %471 : vector<8x1xf32> to vector<8x32xf32>
    %473 = arith.mulf %468, %472 : vector<8x32xf32>
    %474 = vector.broadcast %7 : vector<1x32xf32> to vector<8x32xf32>
    %475 = arith.mulf %473, %474 : vector<8x32xf32>
    %476 = vector.broadcast %8 : vector<1x32xf32> to vector<8x32xf32>
    %477 = arith.addf %475, %476 : vector<8x32xf32>
    %478 = math.tanh %477 : vector<8x32xf32>
    %479 = arith.mulf %450, %478 : vector<8x32xf32>
    %480 = arith.truncf %479 : vector<8x32xf32> to vector<8x32xbf16>
    %481 = arith.index_cast %c5_i32 : i32 to index
    %c0_116 = arith.constant 0 : index
    %c0_117 = arith.constant 0 : index
    %482 = vector.load %arg11[%481, %c0_116, %c0_117] : memref<8x8x32xbf16, #tpu.memory_space<vmem>>, vector<1x8x32xbf16>
    %483 = vector.shape_cast %482 : vector<1x8x32xbf16> to vector<8x32xbf16>
    %484 = vector.shape_cast %480 : vector<8x32xbf16> to vector<1x8x32xbf16>
    tpu.vector_store %arg11[%481, %c0_116, %c0_117], %484 {strides = array<i32>} : memref<8x8x32xbf16, #tpu.memory_space<vmem>>, vector<1x8x32xbf16>,
    %c6_i32 = arith.constant 6 : i32
    %485 = arith.truncf %479 : vector<8x32xf32> to vector<8x32xbf16>
    %cst_118 = arith.constant dense<0.000000e+00> : vector<8x128xf32>
    %486 = tpu.matmul %485, %3, %cst_118 {dimension_numbers = #tpu.dot_dimension_numbers<[1], [0], [0], [1], [0, 0, 1, 1], [], []>} : vector<8x32xbf16>, vector<32x128xbf16>, vector<8x128xf32> -> vector<8x128xf32>
    %487 = vector.broadcast %4 : vector<1x128xf32> to vector<8x128xf32>
    %488 = arith.addf %486, %487 : vector<8x128xf32>
    %489 = arith.index_cast %c6_i32 : i32 to index
    %c0_119 = arith.constant 0 : index
    %c0_120 = arith.constant 0 : index
    %490 = vector.load %arg2[%489, %c0_119, %c0_120] : memref<8x8x128xbf16, #tpu.memory_space<vmem>>, vector<1x8x128xbf16>
    %491 = vector.shape_cast %490 : vector<1x8x128xbf16> to vector<8x128xbf16>
    %492 = arith.extf %491 : vector<8x128xbf16> to vector<8x128xf32>
    %cst_121 = arith.constant dense<0.000000e+00> : vector<8xf32>
    %493 = vector.multi_reduction <add>, %488, %cst_121 [1] : vector<8x128xf32> to vector<8xf32>
    %494 = vector.shape_cast %493 : vector<8xf32> to vector<8x1xf32>
    %cst_122 = arith.constant 7.812500e-03 : f32
    %495 = vector.broadcast %cst_122 : f32 to vector<8x1xf32>
    %496 = arith.mulf %494, %495 : vector<8x1xf32>
    %497 = arith.mulf %488, %488 : vector<8x128xf32>
    %cst_123 = arith.constant dense<0.000000e+00> : vector<8xf32>
    %498 = vector.multi_reduction <add>, %497, %cst_123 [1] : vector<8x128xf32> to vector<8xf32>
    %499 = vector.shape_cast %498 : vector<8xf32> to vector<8x1xf32>
    %cst_124 = arith.constant 7.812500e-03 : f32
    %500 = vector.broadcast %cst_124 : f32 to vector<8x1xf32>
    %501 = arith.mulf %499, %500 : vector<8x1xf32>
    %502 = arith.mulf %496, %496 : vector<8x1xf32>
    %503 = arith.subf %501, %502 : vector<8x1xf32>
    %504 = vector.broadcast %496 : vector<8x1xf32> to vector<8x128xf32>
    %505 = arith.subf %488, %504 : vector<8x128xf32>
    %cst_125 = arith.constant 9.99999974E-6 : f32
    %506 = vector.broadcast %cst_125 : f32 to vector<8x1xf32>
    %507 = arith.addf %503, %506 : vector<8x1xf32>
    %508 = math.rsqrt %507 : vector<8x1xf32>
    %509 = vector.broadcast %508 : vector<8x1xf32> to vector<8x128xf32>
    %510 = arith.mulf %505, %509 : vector<8x128xf32>
    %511 = vector.broadcast %5 : vector<1x128xf32> to vector<8x128xf32>
    %512 = arith.mulf %510, %511 : vector<8x128xf32>
    %513 = vector.broadcast %6 : vector<1x128xf32> to vector<8x128xf32>
    %514 = arith.addf %512, %513 : vector<8x128xf32>
    %515 = arith.addf %492, %514 : vector<8x128xf32>
    %516 = vector.extract_strided_slice %515 {offsets = [0, 0], sizes = [8, 64], strides = [1, 1]} : vector<8x128xf32> to vector<8x64xf32>
    %517 = arith.negf %516 : vector<8x64xf32>
    %518 = math.exp %517 : vector<8x64xf32>
    %cst_126 = arith.constant 1.000000e+00 : f32
    %519 = vector.broadcast %cst_126 : f32 to vector<8x64xf32>
    %520 = arith.addf %519, %518 : vector<8x64xf32>
    %521 = arith.divf %519, %520 : vector<8x64xf32>
    %522 = vector.extract_strided_slice %515 {offsets = [0, 64], sizes = [8, 32], strides = [1, 1]} : vector<8x128xf32> to vector<8x32xf32>
    %523 = math.tanh %522 : vector<8x32xf32>
    %524 = vector.extract_strided_slice %515 {offsets = [0, 96], sizes = [8, 32], strides = [1, 1]} : vector<8x128xf32> to vector<8x32xf32>
    %525 = arith.negf %524 : vector<8x32xf32>
    %526 = math.exp %525 : vector<8x32xf32>
    %cst_127 = arith.constant 1.000000e+00 : f32
    %527 = vector.broadcast %cst_127 : f32 to vector<8x32xf32>
    %528 = arith.addf %527, %526 : vector<8x32xf32>
    %529 = arith.divf %527, %528 : vector<8x32xf32>
    %530 = vector.extract_strided_slice %521 {offsets = [0, 32], sizes = [8, 32], strides = [1, 1]} : vector<8x64xf32> to vector<8x32xf32>
    %531 = arith.mulf %530, %455 : vector<8x32xf32>
    %532 = vector.extract_strided_slice %521 {offsets = [0, 0], sizes = [8, 32], strides = [1, 1]} : vector<8x64xf32> to vector<8x32xf32>
    %533 = arith.mulf %532, %523 : vector<8x32xf32>
    %534 = arith.addf %531, %533 : vector<8x32xf32>
    %cst_128 = arith.constant dense<0.000000e+00> : vector<8xf32>
    %535 = vector.multi_reduction <add>, %534, %cst_128 [1] : vector<8x32xf32> to vector<8xf32>
    %536 = vector.shape_cast %535 : vector<8xf32> to vector<8x1xf32>
    %cst_129 = arith.constant 3.125000e-02 : f32
    %537 = vector.broadcast %cst_129 : f32 to vector<8x1xf32>
    %538 = arith.mulf %536, %537 : vector<8x1xf32>
    %539 = arith.mulf %534, %534 : vector<8x32xf32>
    %cst_130 = arith.constant dense<0.000000e+00> : vector<8xf32>
    %540 = vector.multi_reduction <add>, %539, %cst_130 [1] : vector<8x32xf32> to vector<8xf32>
    %541 = vector.shape_cast %540 : vector<8xf32> to vector<8x1xf32>
    %cst_131 = arith.constant 3.125000e-02 : f32
    %542 = vector.broadcast %cst_131 : f32 to vector<8x1xf32>
    %543 = arith.mulf %541, %542 : vector<8x1xf32>
    %544 = arith.mulf %538, %538 : vector<8x1xf32>
    %545 = arith.subf %543, %544 : vector<8x1xf32>
    %546 = vector.broadcast %538 : vector<8x1xf32> to vector<8x32xf32>
    %547 = arith.subf %534, %546 : vector<8x32xf32>
    %cst_132 = arith.constant 9.99999974E-6 : f32
    %548 = vector.broadcast %cst_132 : f32 to vector<8x1xf32>
    %549 = arith.addf %545, %548 : vector<8x1xf32>
    %550 = math.rsqrt %549 : vector<8x1xf32>
    %551 = vector.broadcast %550 : vector<8x1xf32> to vector<8x32xf32>
    %552 = arith.mulf %547, %551 : vector<8x32xf32>
    %553 = vector.broadcast %7 : vector<1x32xf32> to vector<8x32xf32>
    %554 = arith.mulf %552, %553 : vector<8x32xf32>
    %555 = vector.broadcast %8 : vector<1x32xf32> to vector<8x32xf32>
    %556 = arith.addf %554, %555 : vector<8x32xf32>
    %557 = math.tanh %556 : vector<8x32xf32>
    %558 = arith.mulf %529, %557 : vector<8x32xf32>
    %559 = arith.truncf %558 : vector<8x32xf32> to vector<8x32xbf16>
    %560 = arith.index_cast %c6_i32 : i32 to index
    %c0_133 = arith.constant 0 : index
    %c0_134 = arith.constant 0 : index
    %561 = vector.load %arg11[%560, %c0_133, %c0_134] : memref<8x8x32xbf16, #tpu.memory_space<vmem>>, vector<1x8x32xbf16>
    %562 = vector.shape_cast %561 : vector<1x8x32xbf16> to vector<8x32xbf16>
    %563 = vector.shape_cast %559 : vector<8x32xbf16> to vector<1x8x32xbf16>
    tpu.vector_store %arg11[%560, %c0_133, %c0_134], %563 {strides = array<i32>} : memref<8x8x32xbf16, #tpu.memory_space<vmem>>, vector<1x8x32xbf16>,
    %c7_i32 = arith.constant 7 : i32
    %564 = arith.truncf %558 : vector<8x32xf32> to vector<8x32xbf16>
    %cst_135 = arith.constant dense<0.000000e+00> : vector<8x128xf32>
    %565 = tpu.matmul %564, %3, %cst_135 {dimension_numbers = #tpu.dot_dimension_numbers<[1], [0], [0], [1], [0, 0, 1, 1], [], []>} : vector<8x32xbf16>, vector<32x128xbf16>, vector<8x128xf32> -> vector<8x128xf32>
    %566 = vector.broadcast %4 : vector<1x128xf32> to vector<8x128xf32>
    %567 = arith.addf %565, %566 : vector<8x128xf32>
    %568 = arith.index_cast %c7_i32 : i32 to index
    %c0_136 = arith.constant 0 : index
    %c0_137 = arith.constant 0 : index
    %569 = vector.load %arg2[%568, %c0_136, %c0_137] : memref<8x8x128xbf16, #tpu.memory_space<vmem>>, vector<1x8x128xbf16>
    %570 = vector.shape_cast %569 : vector<1x8x128xbf16> to vector<8x128xbf16>
    %571 = arith.extf %570 : vector<8x128xbf16> to vector<8x128xf32>
    %cst_138 = arith.constant dense<0.000000e+00> : vector<8xf32>
    %572 = vector.multi_reduction <add>, %567, %cst_138 [1] : vector<8x128xf32> to vector<8xf32>
    %573 = vector.shape_cast %572 : vector<8xf32> to vector<8x1xf32>
    %cst_139 = arith.constant 7.812500e-03 : f32
    %574 = vector.broadcast %cst_139 : f32 to vector<8x1xf32>
    %575 = arith.mulf %573, %574 : vector<8x1xf32>
    %576 = arith.mulf %567, %567 : vector<8x128xf32>
    %cst_140 = arith.constant dense<0.000000e+00> : vector<8xf32>
    %577 = vector.multi_reduction <add>, %576, %cst_140 [1] : vector<8x128xf32> to vector<8xf32>
    %578 = vector.shape_cast %577 : vector<8xf32> to vector<8x1xf32>
    %cst_141 = arith.constant 7.812500e-03 : f32
    %579 = vector.broadcast %cst_141 : f32 to vector<8x1xf32>
    %580 = arith.mulf %578, %579 : vector<8x1xf32>
    %581 = arith.mulf %575, %575 : vector<8x1xf32>
    %582 = arith.subf %580, %581 : vector<8x1xf32>
    %583 = vector.broadcast %575 : vector<8x1xf32> to vector<8x128xf32>
    %584 = arith.subf %567, %583 : vector<8x128xf32>
    %cst_142 = arith.constant 9.99999974E-6 : f32
    %585 = vector.broadcast %cst_142 : f32 to vector<8x1xf32>
    %586 = arith.addf %582, %585 : vector<8x1xf32>
    %587 = math.rsqrt %586 : vector<8x1xf32>
    %588 = vector.broadcast %587 : vector<8x1xf32> to vector<8x128xf32>
    %589 = arith.mulf %584, %588 : vector<8x128xf32>
    %590 = vector.broadcast %5 : vector<1x128xf32> to vector<8x128xf32>
    %591 = arith.mulf %589, %590 : vector<8x128xf32>
    %592 = vector.broadcast %6 : vector<1x128xf32> to vector<8x128xf32>
    %593 = arith.addf %591, %592 : vector<8x128xf32>
    %594 = arith.addf %571, %593 : vector<8x128xf32>
    %595 = vector.extract_strided_slice %594 {offsets = [0, 0], sizes = [8, 64], strides = [1, 1]} : vector<8x128xf32> to vector<8x64xf32>
    %596 = arith.negf %595 : vector<8x64xf32>
    %597 = math.exp %596 : vector<8x64xf32>
    %cst_143 = arith.constant 1.000000e+00 : f32
    %598 = vector.broadcast %cst_143 : f32 to vector<8x64xf32>
    %599 = arith.addf %598, %597 : vector<8x64xf32>
    %600 = arith.divf %598, %599 : vector<8x64xf32>
    %601 = vector.extract_strided_slice %594 {offsets = [0, 64], sizes = [8, 32], strides = [1, 1]} : vector<8x128xf32> to vector<8x32xf32>
    %602 = math.tanh %601 : vector<8x32xf32>
    %603 = vector.extract_strided_slice %594 {offsets = [0, 96], sizes = [8, 32], strides = [1, 1]} : vector<8x128xf32> to vector<8x32xf32>
    %604 = arith.negf %603 : vector<8x32xf32>
    %605 = math.exp %604 : vector<8x32xf32>
    %cst_144 = arith.constant 1.000000e+00 : f32
    %606 = vector.broadcast %cst_144 : f32 to vector<8x32xf32>
    %607 = arith.addf %606, %605 : vector<8x32xf32>
    %608 = arith.divf %606, %607 : vector<8x32xf32>
    %609 = vector.extract_strided_slice %600 {offsets = [0, 32], sizes = [8, 32], strides = [1, 1]} : vector<8x64xf32> to vector<8x32xf32>
    %610 = arith.mulf %609, %534 : vector<8x32xf32>
    %611 = vector.extract_strided_slice %600 {offsets = [0, 0], sizes = [8, 32], strides = [1, 1]} : vector<8x64xf32> to vector<8x32xf32>
    %612 = arith.mulf %611, %602 : vector<8x32xf32>
    %613 = arith.addf %610, %612 : vector<8x32xf32>
    %cst_145 = arith.constant dense<0.000000e+00> : vector<8xf32>
    %614 = vector.multi_reduction <add>, %613, %cst_145 [1] : vector<8x32xf32> to vector<8xf32>
    %615 = vector.shape_cast %614 : vector<8xf32> to vector<8x1xf32>
    %cst_146 = arith.constant 3.125000e-02 : f32
    %616 = vector.broadcast %cst_146 : f32 to vector<8x1xf32>
    %617 = arith.mulf %615, %616 : vector<8x1xf32>
    %618 = arith.mulf %613, %613 : vector<8x32xf32>
    %cst_147 = arith.constant dense<0.000000e+00> : vector<8xf32>
    %619 = vector.multi_reduction <add>, %618, %cst_147 [1] : vector<8x32xf32> to vector<8xf32>
    %620 = vector.shape_cast %619 : vector<8xf32> to vector<8x1xf32>
    %cst_148 = arith.constant 3.125000e-02 : f32
    %621 = vector.broadcast %cst_148 : f32 to vector<8x1xf32>
    %622 = arith.mulf %620, %621 : vector<8x1xf32>
    %623 = arith.mulf %617, %617 : vector<8x1xf32>
    %624 = arith.subf %622, %623 : vector<8x1xf32>
    %625 = vector.broadcast %617 : vector<8x1xf32> to vector<8x32xf32>
    %626 = arith.subf %613, %625 : vector<8x32xf32>
    %cst_149 = arith.constant 9.99999974E-6 : f32
    %627 = vector.broadcast %cst_149 : f32 to vector<8x1xf32>
    %628 = arith.addf %624, %627 : vector<8x1xf32>
    %629 = math.rsqrt %628 : vector<8x1xf32>
    %630 = vector.broadcast %629 : vector<8x1xf32> to vector<8x32xf32>
    %631 = arith.mulf %626, %630 : vector<8x32xf32>
    %632 = vector.broadcast %7 : vector<1x32xf32> to vector<8x32xf32>
    %633 = arith.mulf %631, %632 : vector<8x32xf32>
    %634 = vector.broadcast %8 : vector<1x32xf32> to vector<8x32xf32>
    %635 = arith.addf %633, %634 : vector<8x32xf32>
    %636 = math.tanh %635 : vector<8x32xf32>
    %637 = arith.mulf %608, %636 : vector<8x32xf32>
    %638 = arith.truncf %637 : vector<8x32xf32> to vector<8x32xbf16>
    %639 = arith.index_cast %c7_i32 : i32 to index
    %c0_150 = arith.constant 0 : index
    %c0_151 = arith.constant 0 : index
    %640 = vector.load %arg11[%639, %c0_150, %c0_151] : memref<8x8x32xbf16, #tpu.memory_space<vmem>>, vector<1x8x32xbf16>
    %641 = vector.shape_cast %640 : vector<1x8x32xbf16> to vector<8x32xbf16>
    %642 = vector.shape_cast %638 : vector<8x32xbf16> to vector<1x8x32xbf16>
    tpu.vector_store %arg11[%639, %c0_150, %c0_151], %642 {strides = array<i32>} : memref<8x8x32xbf16, #tpu.memory_space<vmem>>, vector<1x8x32xbf16>,
    %c8_i32 = arith.constant 8 : i32
    %c0_152 = arith.constant 0 : index
    %c0_153 = arith.constant 0 : index
    %643 = vector.load %arg14[%c0_152, %c0_153] : memref<8x32xf32, #tpu.memory_space<vmem>>, vector<8x32xf32>
    tpu.vector_store %arg14[%c0_152, %c0_153], %637 {strides = array<i32>} : memref<8x32xf32, #tpu.memory_space<vmem>>, vector<8x32xf32>,
    %c0_154 = arith.constant 0 : index
    %c0_155 = arith.constant 0 : index
    %644 = vector.load %arg15[%c0_154, %c0_155] : memref<8x32xf32, #tpu.memory_space<vmem>>, vector<8x32xf32>
    tpu.vector_store %arg15[%c0_154, %c0_155], %613 {strides = array<i32>} : memref<8x32xf32, #tpu.memory_space<vmem>>, vector<8x32xf32>,
    %c0_i32_156 = arith.constant 0 : i32
    %645 = arith.cmpi eq, %arg1, %c0_i32_156 : i32
    %646 = arith.extui %645 : i1 to i32
    %c0_i32_157 = arith.constant 0 : i32
    %647 = arith.cmpi ne, %646, %c0_i32_157 : i32
    scf.if %647 {
      %c0_158 = arith.constant 0 : index
      %c0_159 = arith.constant 0 : index
      %648 = vector.load %arg12[%c0_158, %c0_159] : memref<8x32xf32, #tpu.memory_space<vmem>>, vector<8x32xf32>
      tpu.vector_store %arg12[%c0_158, %c0_159], %637 {strides = array<i32>} : memref<8x32xf32, #tpu.memory_space<vmem>>, vector<8x32xf32>,
      %c0_160 = arith.constant 0 : index
      %c0_161 = arith.constant 0 : index
      %649 = vector.load %arg13[%c0_160, %c0_161] : memref<8x32xf32, #tpu.memory_space<vmem>>, vector<8x32xf32>
      tpu.vector_store %arg13[%c0_160, %c0_161], %613 {strides = array<i32>} : memref<8x32xf32, #tpu.memory_space<vmem>>, vector<8x32xf32>,
    } else {
    }
    return
  }
  func.func @transform_0(%arg0: i32, %arg1: i32) -> (i32, i32, i32) {
    %c0_i32 = arith.constant 0 : i32
    %c0_i32_0 = arith.constant 0 : i32
    return %arg1, %arg0, %c0_i32 : i32, i32, i32
  }
  func.func @transform_1(%arg0: i32, %arg1: i32) -> (i32, i32) {
    %c0_i32 = arith.constant 0 : i32
    %c0_i32_0 = arith.constant 0 : i32
    return %arg0, %c0_i32 : i32, i32
  }
  func.func @transform_2(%arg0: i32, %arg1: i32) -> (i32, i32) {
    %c0_i32 = arith.constant 0 : i32
    %c0_i32_0 = arith.constant 0 : i32
    return %arg0, %c0_i32 : i32, i32
  }
  func.func @transform_4(%arg0: i32, %arg1: i32) -> (i32, i32) {
    %c0_i32 = arith.constant 0 : i32
    %c0_i32_0 = arith.constant 0 : i32
    %c0_i32_1 = arith.constant 0 : i32
    return %c0_i32, %c0_i32_0 : i32, i32
  }
  func.func @transform_5(%arg0: i32, %arg1: i32) -> (i32, i32) {
    %c0_i32 = arith.constant 0 : i32
    %c0_i32_0 = arith.constant 0 : i32
    %c0_i32_1 = arith.constant 0 : i32
    return %c0_i32, %c0_i32_0 : i32, i32
  }
  func.func @transform_6(%arg0: i32, %arg1: i32) -> (i32, i32) {
    %c0_i32 = arith.constant 0 : i32
    %c0_i32_0 = arith.constant 0 : i32
    %c0_i32_1 = arith.constant 0 : i32
    return %c0_i32, %c0_i32_0 : i32, i32
  }
  func.func @transform_7(%arg0: i32, %arg1: i32) -> (i32, i32) {
    %c0_i32 = arith.constant 0 : i32
    %c0_i32_0 = arith.constant 0 : i32
    %c0_i32_1 = arith.constant 0 : i32
    return %c0_i32, %c0_i32_0 : i32, i32
  }
  func.func @transform_8(%arg0: i32, %arg1: i32) -> (i32, i32) {
    %c0_i32 = arith.constant 0 : i32
    %c0_i32_0 = arith.constant 0 : i32
    %c0_i32_1 = arith.constant 0 : i32
    return %c0_i32, %c0_i32_0 : i32, i32
  }
  func.func @transform_9(%arg0: i32, %arg1: i32) -> (i32, i32, i32) {
    %c0_i32 = arith.constant 0 : i32
    %c0_i32_0 = arith.constant 0 : i32
    return %arg1, %arg0, %c0_i32 : i32, i32, i32
  }
  func.func @transform_10(%arg0: i32, %arg1: i32) -> (i32, i32) {
    %c0_i32 = arith.constant 0 : i32
    %c0_i32_0 = arith.constant 0 : i32
    return %arg0, %c0_i32 : i32, i32
  }
  func.func @transform_11(%arg0: i32, %arg1: i32) -> (i32, i32) {
    %c0_i32 = arith.constant 0 : i32
    %c0_i32_0 = arith.constant 0 : i32
    return %arg0, %c0_i32 : i32, i32
  }
}

</mosaic_0001>

<bundles_post_ra>
// kernel: tpu_custom_call.1
= control target key start
LH: loop header
LB: loop body
LE: loop exit
PB: predicated region body
PF: predicated region fallthrough
CT: control target
= control target key end

     0   :  { %17 = vsyncpa [#allocation7], 0  ;;  %s2080_s0 = inlined_call_operand.hbm [shape: bf16[8,8,128], index: 0, kind: input, shape index: {}]   ;;  %s2081_s1 = inlined_call_operand.hbm [shape: f32[8,32], index: 1, kind: input, shape index: {}]   ;;  %s2082_s2 = inlined_call_operand.hbm [shape: f32[8,32], index: 2, kind: input, shape index: {}]   ;;  %s2083_s3 = inlined_call_operand.hbm [shape: bf16[32,128], index: 3, kind: input, shape index: {}]   ;;  %s2084_s4 = inlined_call_operand.vmem [shape: f32[1,128], index: 4, kind: input, shape index: {}]   ;;  %s2085_s5 = inlined_call_operand.vmem [shape: f32[1,128], index: 5, kind: input, shape index: {}]   ;;  %s2086_s6 = inlined_call_operand.vmem [shape: f32[1,128], index: 6, kind: input, shape index: {}]   ;;  %s2087_s7 = inlined_call_operand.vmem [shape: f32[1,32], index: 7, kind: input, shape index: {}]   ;;  %s2088_s8 = inlined_call_operand.vmem [shape: f32[1,32], index: 8, kind: input, shape index: {}]   ;;  %s2089_s9 = inlined_call_operand.hbm [shape: bf16[8,8,32], index: 9, kind: output, shape index: {0}]   ;;  %s2090_s10 = inlined_call_operand.hbm [shape: f32[8,32], index: 10, kind: output, shape index: {1}]   ;;  %s2091_s11 = inlined_call_operand.hbm [shape: f32[8,32], index: 11, kind: output, shape index: {2}]  }
   0x1   :  { %18 = vsyncpa [#allocation10], 0 }
   0x2   :  { %19 = vsyncpa [#allocation8], 0 }
   0x3   :  { %20 = vsyncpa [#allocation14], 0  ;;  %s1583_s17 = smov [#allocation9]   ;;  %s1584_s19 = smov [#allocation6]  }
   0x4   :  { %s39_s18 = sshll.u32 %s1583_s17, 4  ;;  %s26_s20 = sshll.u32 %s1584_s19, 4  ;;  %s40_s18 = int_to_ptr.vmem [resolvable:$true] %s39_s18  ;;  %s1656_s20 = int_to_ptr.vmem [resolvable:$true] %s26_s20 }
   0x5   :  { %s1419_s23 = scalar_lea.hbm %s2081_s1, 128 }
   0x6   :  { %p1420_p0 = scmp.ne.s32.totalorder %s2081_s1, %s1419_s23  ;;  %p1423_p1 = scmp.lt.u32.totalorder %s1419_s23, %s2081_s1 }
   0x8   :  { %p1425_p2 = pnand %p1423_p1, %p1420_p0 }
   0xa   :  { %1428 = shalt.err (!%p1425_p2)
}
   0xb   :  { %s1429_s28 = scalar_lea.vmem %s40_s18, 128  ;;  %p1434_p4 = scmp.lt.s32.totalorder %s40_s18, %s40_s18 }
   0xc   :  { %p1430_p3 = scmp.ne.s32.totalorder %s40_s18, %s1429_s28  ;;  %p1435_p5 = scmp.lt.s32.totalorder %s1429_s28, %s1429_s28 }
   0xe   :  { %p1436_p6 = por %p1435_p5, %p1434_p4 }
  0x10   :  { %p1437_p7 = pnand %p1436_p6, %p1430_p3 }
  0x12   :  { %1440 = shalt.err (!%p1437_p7)
}
  0x13   :  { %42 = dma.hbm_to_vmem [thread:$0]  %s2081_s1, 128, %s40_s18, [#allocation10]  }
  0x14   :  { %s1441_s14 = scalar_lea.hbm %s2080_s0, 512 }
  0x15   :  { %p1442_p8 = scmp.ne.s32.totalorder %s2080_s0, %s1441_s14  ;;  %p1445_p9 = scmp.lt.u32.totalorder %s1441_s14, %s2080_s0 }
  0x17   :  { %p1447_p10 = pnand %p1445_p9, %p1442_p8 }
  0x19   :  { %1450 = shalt.err (!%p1447_p10)
}
  0x1a   :  { %s1451_s21 = scalar_lea.vmem %s1656_s20, 512  ;;  %p1456_p12 = scmp.lt.s32.totalorder %s1656_s20, %s1656_s20 }
  0x1b   :  { %p1452_p11 = scmp.ne.s32.totalorder %s1656_s20, %s1451_s21  ;;  %p1457_p13 = scmp.lt.s32.totalorder %s1451_s21, %s1451_s21 }
  0x1d   :  { %p1458_p0 = por %p1457_p13, %p1456_p12 }
  0x1f   :  { %p1459_p1 = pnand %p1458_p0, %p1452_p11 }
  0x21   :  { %1462 = shalt.err (!%p1459_p1)
}
  0x22   :  { %s1585_s1 = smov 64   ;;  %s1586_s18 = smov 4  }
  0x23   :  { %32 = dma.hbm_to_vmem [thread:$0]  %s2080_s0, 512, %s1656_s20, [#allocation7], %s1585_s1, %s1585_s1, %s1586_s18  }
  0x24   :  { %s1587_s24 = smov [#allocation11]   ;;  %s1463_s28 = scalar_lea.hbm %s2082_s2, 128 }
  0x25   :  { %s49_s25 = sshll.u32 %s1587_s24, 4  ;;  %p1464_p2 = scmp.ne.s32.totalorder %s2082_s2, %s1463_s28  ;;  %s50_s25 = int_to_ptr.vmem [resolvable:$true] %s49_s25 }
  0x26   :  { %p1467_p3 = scmp.lt.u32.totalorder %s1463_s28, %s2082_s2 }
  0x28   :  { %p1469_p4 = pnand %p1467_p3, %p1464_p2 }
  0x2a   :  { %1472 = shalt.err (!%p1469_p4)
}
  0x2b   :  { %s1473_s14 = scalar_lea.vmem %s50_s25, 128  ;;  %p1478_p6 = scmp.lt.s32.totalorder %s50_s25, %s50_s25 }
  0x2c   :  { %p1474_p5 = scmp.ne.s32.totalorder %s50_s25, %s1473_s14  ;;  %p1479_p7 = scmp.lt.s32.totalorder %s1473_s14, %s1473_s14 }
  0x2e   :  { %p1480_p8 = por %p1479_p7, %p1478_p6 }
  0x30   :  { %p1481_p9 = pnand %p1480_p8, %p1474_p5 }
  0x32   :  { %1484 = shalt.err (!%p1481_p9)
}
  0x33   :  { %52 = dma.hbm_to_vmem [thread:$0]  %s2082_s2, 128, %s50_s25, [#allocation10]  }
  0x34   :  { %1573 = dma.done.wait [#allocation7], 512  }
  0x35   :  { %1574 = vsyncadd [#allocation7], 4294966784 }
  0x36   :  { %1575 = dma.done.wait [#allocation10], 256  }
  0x37   :  { %1576 = vsyncadd [#allocation10], 4294967040  ;;  %s1588_s15 = smov [#allocation4]   ;;  %s1485_s21 = scalar_lea.hbm %s2083_s3, 256 }
  0x38   :  { %s84_s16 = sshll.u32 %s1588_s15, 4  ;;  %p1486_p10 = scmp.ne.s32.totalorder %s2083_s3, %s1485_s21  ;;  %s85_s16 = int_to_ptr.vmem [resolvable:$true] %s84_s16 }
  0x39   :  { %p1489_p11 = scmp.lt.u32.totalorder %s1485_s21, %s2083_s3 }
  0x3b   :  { %p1491_p12 = pnand %p1489_p11, %p1486_p10 }
  0x3d   :  { %1494 = shalt.err (!%p1491_p12)  }
  0x3e   :  { %s1495_s2 = scalar_lea.vmem %s85_s16, 256  ;;  %p1500_p0 = scmp.lt.s32.totalorder %s85_s16, %s85_s16 }
  0x3f   :  { %p1496_p13 = scmp.ne.s32.totalorder %s85_s16, %s1495_s2  ;;  %p1501_p1 = scmp.lt.s32.totalorder %s1495_s2, %s1495_s2 }
  0x41   :  { %p1502_p2 = por %p1501_p1, %p1500_p0 }
  0x43   :  { %p1503_p3 = pnand %p1502_p2, %p1496_p13 }
  0x45   :  { %1506 = shalt.err (!%p1503_p3)  }
  0x46   :  { %87 = dma.hbm_to_vmem [thread:$0]  %s2083_s3, 256, %s85_s16, [#allocation5]  ;;  %vm89_vm0 = vcmask 261120   ;;  %v88_v0 = vld [vmem:[#allocation9] sm:$0xff]  ;;  %v91_v1 = vld [vmem:[#allocation11] sm:$0xff] }
  0x47   :  { %90 = vst.msk [vmem:[#allocation2] sm:$0xff] %vm89_vm0, %v88_v0  ;;  %92 = vst.msk [vmem:[#allocation3] sm:$0xff] %vm89_vm0, %v91_v1 }
  0x48   :  { %1577 = dma.done.wait [#allocation5], 256 }
  0x49   :  { %1578 = vsyncadd [#allocation5], 4294967040  ;;  %v1589_v2 = vmov 0.0   ;;  %vm1590_vm1 = vmmov 0   ;;  %v1722_v3 = vld [vmem:[#allocation4] sm:$0xff]  ;;  %v1727_v5 = vld [vmem:[#allocation4 + $0x8] sm:$0xff] }
  0x4a   :  { %1243 = vmatprep.subr.bf16.mxu0 %v1589_v2  ;;  %1247 = vmatprep.mubr.msk.bf16.mxu0 %vm1590_vm1, %v1589_v2  ;;  %v1744_v7 = vld [vmem:[%s2084_s4] ss:$0 sm:$0xff]  ;;  %s1591_s14 = smov 32   ;;  %s1592_s0 = smov 96   ;;  %vm263_vm2 = vcmask 257024  }
  0x4b   :  { %1251 = vmatprep.subr.bf16.mxu1 %v1589_v2  ;;  %1255 = vmatprep.mubr.msk.bf16.mxu1 %vm1590_vm1, %v1589_v2  ;;  %v1750_v23 = vld [vmem:[%s2085_s5] ss:$0 sm:$0xff]  ;;  %s1594_s23 = smov [#allocation15]   ;;  %s1595_s26 = smov [#allocation12]  }
  0x4c   :  { %1244 = vmatpush3.bf16.msra.mxu0 %v1722_v3  ;;  %1252 = vmatpush3.bf16.msra.mxu1 %v1722_v3  ;;  %v1752_v24 = vld [vmem:[#allocation6] sm:$0xff]   ;;  %s1158_s24 = sshll.u32 %s1594_s23, 4  ;;  %s1135_s2 = sshll.u32 %s1595_s26, 4  ;;  %s2024_s24 = int_to_ptr.vmem [resolvable:$true] %s1158_s24  ;;  %s2028_s2 = int_to_ptr.vmem [resolvable:$true] %s1135_s2 }
  0x4d   :  { %1245 = vmatprep.subr.bf16.mxu0 %v1589_v2  ;;  %1253 = vmatprep.subr.bf16.mxu1 %v1589_v2  ;;  %v1757_v26 = vld [vmem:[%s2086_s6] ss:$0 sm:$0xff]  ;;  %v158_v27 = vunpack.c.l.bf16 %v1752_v24 }
  0x4e   :  { %v104_v4 = vld [vmem:[#allocation2] sm:$0xff]  ;;  %v105_v32 = vld [vmem:[#allocation3] sm:$0xff] }
  0x4f   :  { %v106_v6 = vpack.c.bf16 %v104_v4, %v104_v4  ;;  %v1186_v48 = vld [vmem:[%s2087_s7] ss:$0 sm:$0xff] }
  0x50   :  { %1246 = vmatpush3.bf16.msra.mxu0 %v1727_v5  ;;  %1254 = vmatpush3.bf16.msra.mxu1 %v1727_v5  ;;  %v1187_v49 = vld [vmem:[%s2088_s8] ss:$0 sm:$0xff] }
  0x51   :  { %1259 = vmatprep.subr.bf16.mxu0 %v1589_v2  ;;  %1267 = vmatprep.subr.bf16.mxu1 %v1589_v2 }
  0x53   :  { %1248 = vmatmul.mubr.msk.bf16.vlgmr.msra.gmra.mrb[0].mxu0 %vm89_vm0, %v106_v6 }
  0x54   :  { %1260 = vmatpush3.bf16.msra.mxu0 %v1722_v3  ;;  %1263 = vmatprep.mubr.msk.bf16.mxu0 %vm1590_vm1, %v1589_v2 }
  0x55   :  { %1261 = vmatprep.subr.bf16.mxu0 %v1589_v2 }
  0x58   :  { %1262 = vmatpush3.bf16.msra.mxu0 %v1727_v5 }
  0x59   :  { %1275 = vmatprep.subr.bf16.mxu0 %v1589_v2 }
 0x126   :  { %v151_v8 = vpop.f32.mrb[0].mxu0 }
 0x127   :  { %v152_v9 = vadd.f32 %v1744_v7, %v151_v8  ;;  %v1249_v10 = vpop.f32.mrb[1].mxu0 }
 0x128   :  { %v154_v11 = vpop.f32.mrb[2].mxu0 }
 0x129   :  { %159 = vadd.xlane.f32.xlu0 %v152_v9  ;;  %v1250_v12 = vpop.f32.mrb[3].mxu0  ;;  %v162_v13 = vmul.f32 %v152_v9, %v152_v9 }
 0x12d   :  { %163 = vadd.xlane.f32.xlu0 %v162_v13 }
 0x1b6   :  { %v160_v14 = vpop.xlane.xlu0 %159 }
 0x1b7   :  { %v161_v15 = vmul.f32 0.0078125, %v160_v14 }
 0x1b9   :  { %v166_v17 = vmul.f32 %v161_v15, %v161_v15  ;;  %v168_v21 = vsub.f32 %v152_v9, %v161_v15 }
 0x1ba   :  { %v164_v16 = vpop.xlane.xlu0 %163 }
 0x1bb   :  { %v165_v18 = vmul.f32 0.0078125, %v164_v16 }
 0x1bd   :  { %v167_v19 = vsub.f32 %v165_v18, %v166_v17 }
 0x1bf   :  { %v169_v20 = vadd.f32 1e-05, %v167_v19 }
 0x1c1   :  { %1320 = vrsqrt.f32 %v169_v20 }
 0x1cb   :  { %v1321_v22 = vpop.eup %1320 }
 0x1cc   :  { %v171_v25 = vmul.f32 %v1321_v22, %v168_v21 }
 0x1ce   :  { %v178_v28 = vmul.f32 %v1750_v23, %v171_v25 }
 0x1d0   :  { %v185_v29 = vadd.f32 %v1757_v26, %v178_v28  ;;  %v312_v28 = vunpack.c.h.bf16 %v1752_v24 }
 0x1d2   :  { %v186_v30 = vadd.f32 %v185_v29, %v158_v27 }
 0x1d4   :  { %1322 = vtanh.f32 %v186_v30  ;;  %v1185_v33 = vmul.f32 -1.442695, %v186_v30 }
 0x1d6   :  { %1324 = vpow2.f32 %v1185_v33 }
 0x1de   :  { %v1323_v31 = vpop.eup %1322 }
 0x1df   :  { %200 = vrot.lane.b32.xlu1 %v1323_v31, %s1585_s1 }
 0x1e0   :  { %v1325_v34 = vpop.eup %1324 }
 0x1e1   :  { %v190_v35 = vadd.f32 1.0, %v1325_v34 }
 0x1e3   :  { %195 = vrot.lane.b32.xlu1 %v105_v32, %s1591_s14  ;;  %1326 = vrcp.f32 %v190_v35 }
 0x1ed   :  { %v1327_v36 = vpop.eup %1326 }
 0x251   :  { %v201_v37 = vpop.permute.xlu1 %200 }
 0x252   :  { %v203_v38 = vmul.f32 %v1327_v36, %v201_v37 }
 0x254   :  { %205 = vrot.lane.b32.xlu0 %v203_v38, %s1591_s14 }
 0x255   :  { %v196_v39 = vpop.permute.xlu1 %195 }
 0x256   :  { %v198_v40 = vmul.f32 %v1327_v36, %v196_v39 }
 0x2c6   :  { %v206_v41 = vpop.permute.xlu0 %205 }
 0x2c7   :  { %v1765_v42 = vadd.f32 %v206_v41, %v198_v40 }
 0x2c9   :  { %210 = vrot.lane.b32.xlu1 %v1765_v42, %s1592_s0  ;;  %v217_v43 = vmul.f32 %v1765_v42, %v1765_v42 }
 0x2cd   :  { %219 = vrot.lane.b32.xlu1 %v217_v43, %s1592_s0 }
 0x33b   :  { %v211_v44 = vpop.permute.xlu1 %210 }
 0x33c   :  { %v213_v45 = vsel %vm89_vm0, %v211_v44, 0.0 }
 0x33d   :  { %214 = vadd.xlane.f32.xlu1 %v213_v45 }
 0x33f   :  { %v220_v46 = vpop.permute.xlu1 %219 }
 0x340   :  { %v222_v47 = vsel %vm89_vm0, %v220_v46, 0.0 }
 0x341   :  { %223 = vadd.xlane.f32.xlu0 %v222_v47 }
 0x34e   :  { %237 = vrot.lane.b32.xlu1 %v1186_v48, %s1591_s14 }
 0x357   :  { %246 = vrot.lane.b32.xlu0 %v1187_v49, %s1591_s14 }
 0x3ca   :  { %v215_v50 = vpop.xlane.xlu1 %214 }
 0x3cb   :  { %v216_v51 = vmul.f32 0.03125, %v215_v50 }
 0x3cd   :  { %v226_v53 = vmul.f32 %v216_v51, %v216_v51  ;;  %v228_v57 = vsub.f32 %v1765_v42, %v216_v51 }
 0x3ce   :  { %v224_v52 = vpop.xlane.xlu0 %223  ;;  %v1783_v59 = vpop.permute.xlu1 %237 }
 0x3cf   :  { %v225_v54 = vmul.f32 0.03125, %v224_v52 }
 0x3d1   :  { %v227_v55 = vsub.f32 %v225_v54, %v226_v53 }
 0x3d2   :  { %v1785_v61 = vpop.permute.xlu0 %246 }
 0x3d3   :  { %v229_v56 = vadd.f32 1e-05, %v227_v55 }
 0x3d5   :  { %1328 = vrsqrt.f32 %v229_v56 }
 0x3df   :  { %v1329_v58 = vpop.eup %1328 }
 0x3e0   :  { %v231_v60 = vmul.f32 %v1329_v58, %v228_v57 }
 0x3e2   :  { %v240_v62 = vmul.f32 %v1783_v59, %v231_v60 }
 0x3e4   :  { %v249_v63 = vadd.f32 %v1785_v61, %v240_v62 }
 0x3e6   :  { %1330 = vtanh.f32 %v249_v63 }
 0x3f0   :  { %v1331_v0 = vpop.eup %1330 }
 0x3f1   :  { %252 = vrot.lane.b32.xlu1 %v1331_v0, %s1585_s1 }
 0x463   :  { %v253_v1 = vpop.permute.xlu1 %252 }
 0x464   :  { %v255_v4 = vmul.f32 %v1327_v36, %v253_v1 }
 0x466   :  { %v1790_v6 = vpack.c.bf16 %v255_v4, %v255_v4 }
 0x468   :  { %265 = vrot.lane.b32.xlu1 %v1790_v6, %s1591_s14 }
 0x4da   :  { %v266_v8 = vpop.permute.xlu1 %265 }
 0x4db   :  { %1256 = vmatmul.mubr.msk.bf16.vlgmr.msra.gmra.mrb[0].mxu1 %vm89_vm0, %v266_v8 }
 0x4dc   :  { %1268 = vmatpush3.bf16.msra.mxu1 %v1722_v3  ;;  %1271 = vmatprep.mubr.msk.bf16.mxu1 %vm1590_vm1, %v1589_v2 }
 0x4dd   :  { %1269 = vmatprep.subr.bf16.mxu1 %v1589_v2 }
 0x4e0   :  { %1270 = vmatpush3.bf16.msra.mxu1 %v1727_v5 }
 0x4e1   :  { %1283 = vmatprep.subr.bf16.mxu1 %v1589_v2 }
 0x5ae   :  { %v304_v9 = vpop.f32.mrb[0].mxu1 }
 0x5af   :  { %v305_v10 = vadd.f32 %v1744_v7, %v304_v9  ;;  %v1257_v11 = vpop.f32.mrb[1].mxu1 }
 0x5b0   :  { %v307_v12 = vpop.f32.mrb[2].mxu1 }
 0x5b1   :  { %313 = vadd.xlane.f32.xlu1 %v305_v10  ;;  %v1258_v13 = vpop.f32.mrb[3].mxu1  ;;  %v316_v14 = vmul.f32 %v305_v10, %v305_v10 }
 0x5b3   :  { %317 = vadd.xlane.f32.xlu0 %v316_v14 }
 0x63e   :  { %v314_v15 = vpop.xlane.xlu1 %313 }
 0x63f   :  { %v315_v16 = vmul.f32 0.0078125, %v314_v15 }
 0x640   :  { %v318_v17 = vpop.xlane.xlu0 %317 }
 0x641   :  { %v320_v18 = vmul.f32 %v315_v16, %v315_v16  ;;  %v319_v19 = vmul.f32 0.0078125, %v318_v17  ;;  %v322_v22 = vsub.f32 %v305_v10, %v315_v16 }
 0x643   :  { %v321_v20 = vsub.f32 %v319_v19, %v320_v18 }
 0x645   :  { %v323_v21 = vadd.f32 1e-05, %v321_v20 }
 0x647   :  { %1332 = vrsqrt.f32 %v323_v21  ;;  %v1833_v21 = vld [vmem:[#allocation6 + $0x8] sm:$0xff]  }
 0x651   :  { %v1333_v25 = vpop.eup %1332 }
 0x652   :  { %v325_v27 = vmul.f32 %v1333_v25, %v322_v22  ;;  %v434_v25 = vunpack.c.l.bf16 %v1833_v21 }
 0x654   :  { %v326_v29 = vmul.f32 %v1750_v23, %v325_v27 }
 0x656   :  { %v327_v30 = vadd.f32 %v1757_v26, %v326_v29 }
 0x658   :  { %v328_v31 = vadd.f32 %v327_v30, %v312_v28 }
 0x65a   :  { %1334 = vtanh.f32 %v328_v31  ;;  %v1190_v33 = vmul.f32 -1.442695, %v328_v31 }
 0x65c   :  { %1336 = vpow2.f32 %v1190_v33 }
 0x664   :  { %v1335_v32 = vpop.eup %1334 }
 0x665   :  { %338 = vrot.lane.b32.xlu1 %v1335_v32, %s1585_s1 }
 0x666   :  { %v1337_v34 = vpop.eup %1336 }
 0x667   :  { %v332_v35 = vadd.f32 1.0, %v1337_v34 }
 0x669   :  { %1338 = vrcp.f32 %v332_v35 }
 0x673   :  { %v1339_v36 = vpop.eup %1338 }
 0x674   :  { %v336_v24 = vmul.f32 %v1339_v36, %v1765_v42 }
 0x6d7   :  { %v339_v37 = vpop.permute.xlu1 %338 }
 0x6d8   :  { %v341_v38 = vmul.f32 %v1339_v36, %v339_v37 }
 0x6da   :  { %343 = vrot.lane.b32.xlu0 %v341_v38, %s1591_s14 }
 0x74c   :  { %v344_v39 = vpop.permute.xlu0 %343 }
 0x74d   :  { %v1808_v40 = vadd.f32 %v344_v39, %v336_v24 }
 0x74f   :  { %348 = vrot.lane.b32.xlu1 %v1808_v40, %s1592_s0  ;;  %v355_v41 = vmul.f32 %v1808_v40, %v1808_v40 }
 0x753   :  { %357 = vrot.lane.b32.xlu1 %v355_v41, %s1592_s0 }
 0x7c1   :  { %v349_v43 = vpop.permute.xlu1 %348 }
 0x7c2   :  { %v351_v44 = vsel %vm89_vm0, %v349_v43, 0.0 }
 0x7c3   :  { %352 = vadd.xlane.f32.xlu0 %v351_v44 }
 0x7c5   :  { %v358_v45 = vpop.permute.xlu1 %357 }
 0x7c6   :  { %v360_v46 = vsel %vm89_vm0, %v358_v45, 0.0 }
 0x7c7   :  { %361 = vadd.xlane.f32.xlu1 %v360_v46 }
 0x850   :  { %v353_v42 = vpop.xlane.xlu0 %352 }
 0x851   :  { %v354_v47 = vmul.f32 0.03125, %v353_v42 }
 0x853   :  { %v364_v49 = vmul.f32 %v354_v47, %v354_v47  ;;  %v366_v53 = vsub.f32 %v1808_v40, %v354_v47 }
 0x854   :  { %v362_v48 = vpop.xlane.xlu1 %361 }
 0x855   :  { %v363_v50 = vmul.f32 0.03125, %v362_v48 }
 0x857   :  { %v365_v51 = vsub.f32 %v363_v50, %v364_v49 }
 0x859   :  { %v367_v52 = vadd.f32 1e-05, %v365_v51 }
 0x85b   :  { %1340 = vrsqrt.f32 %v367_v52 }
 0x865   :  { %v1341_v54 = vpop.eup %1340 }
 0x866   :  { %v369_v55 = vmul.f32 %v1341_v54, %v366_v53 }
 0x868   :  { %v370_v56 = vmul.f32 %v369_v55, %v1783_v59 }
 0x86a   :  { %v371_v57 = vadd.f32 %v370_v56, %v1785_v61 }
 0x86c   :  { %1342 = vtanh.f32 %v371_v57 }
 0x876   :  { %v1343_v58 = vpop.eup %1342 }
 0x877   :  { %374 = vrot.lane.b32.xlu0 %v1343_v58, %s1585_s1 }
 0x8e9   :  { %v375_v60 = vpop.permute.xlu0 %374 }
 0x8ea   :  { %v377_v62 = vmul.f32 %v1339_v36, %v375_v60 }
 0x8ec   :  { %v1821_v63 = vpack.c.bf16 %v377_v62, %v377_v62 }
 0x8ee   :  { %387 = vrot.lane.b32.xlu1 %v1821_v63, %s1591_s14 }
 0x960   :  { %v388_v0 = vpop.permute.xlu1 %387 }
 0x961   :  { %1264 = vmatmul.mubr.msk.bf16.vlgmr.msra.gmra.mrb[4].mxu0 %vm89_vm0, %v388_v0 }
 0x962   :  { %1276 = vmatpush3.bf16.msra.mxu0 %v1722_v3  ;;  %1279 = vmatprep.mubr.msk.bf16.mxu0 %vm1590_vm1, %v1589_v2 }
 0x963   :  { %1277 = vmatprep.subr.bf16.mxu0 %v1589_v2 }
 0x966   :  { %1278 = vmatpush3.bf16.msra.mxu0 %v1727_v5 }
 0x967   :  { %1291 = vmatprep.subr.bf16.mxu0 %v1589_v2 }
 0xa34   :  { %v426_v1 = vpop.f32.mrb[4].mxu0 }
 0xa35   :  { %v427_v4 = vadd.f32 %v1744_v7, %v426_v1  ;;  %v1265_v8 = vpop.f32.mrb[5].mxu0 }
 0xa36   :  { %v429_v9 = vpop.f32.mrb[6].mxu0 }
 0xa37   :  { %435 = vadd.xlane.f32.xlu0 %v427_v4  ;;  %v1266_v10 = vpop.f32.mrb[7].mxu0  ;;  %v438_v11 = vmul.f32 %v427_v4, %v427_v4 }
 0xa39   :  { %439 = vadd.xlane.f32.xlu1 %v438_v11 }
 0xac4   :  { %v436_v12 = vpop.xlane.xlu0 %435 }
 0xac5   :  { %v437_v13 = vmul.f32 0.0078125, %v436_v12 }
 0xac6   :  { %v440_v14 = vpop.xlane.xlu1 %439 }
 0xac7   :  { %v442_v15 = vmul.f32 %v437_v13, %v437_v13  ;;  %v441_v16 = vmul.f32 0.0078125, %v440_v14  ;;  %v444_v19 = vsub.f32 %v427_v4, %v437_v13 }
 0xac9   :  { %v443_v17 = vsub.f32 %v441_v16, %v442_v15 }
 0xacb   :  { %v445_v18 = vadd.f32 1e-05, %v443_v17 }
 0xacd   :  { %1344 = vrsqrt.f32 %v445_v18 }
 0xad7   :  { %v1345_v20 = vpop.eup %1344 }
 0xad8   :  { %v447_v22 = vmul.f32 %v1345_v20, %v444_v19 }
 0xada   :  { %v448_v27 = vmul.f32 %v1750_v23, %v447_v22  ;;  %v556_v22 = vunpack.c.h.bf16 %v1833_v21 }
 0xadc   :  { %v449_v28 = vadd.f32 %v1757_v26, %v448_v27 }
 0xade   :  { %v450_v29 = vadd.f32 %v449_v28, %v434_v25 }
 0xae0   :  { %1346 = vtanh.f32 %v450_v29  ;;  %v1193_v31 = vmul.f32 -1.442695, %v450_v29 }
 0xae2   :  { %1348 = vpow2.f32 %v1193_v31 }
 0xaea   :  { %v1347_v30 = vpop.eup %1346 }
 0xaeb   :  { %460 = vrot.lane.b32.xlu0 %v1347_v30, %s1585_s1 }
 0xaec   :  { %v1349_v32 = vpop.eup %1348 }
 0xaed   :  { %v454_v33 = vadd.f32 1.0, %v1349_v32 }
 0xaef   :  { %1350 = vrcp.f32 %v454_v33 }
 0xaf9   :  { %v1351_v34 = vpop.eup %1350 }
 0xafa   :  { %v458_v37 = vmul.f32 %v1351_v34, %v1808_v40 }
 0xb5d   :  { %v461_v35 = vpop.permute.xlu0 %460 }
 0xb5e   :  { %v463_v36 = vmul.f32 %v1351_v34, %v461_v35 }
 0xb60   :  { %465 = vrot.lane.b32.xlu1 %v463_v36, %s1591_s14 }
 0xbd2   :  { %v466_v38 = vpop.permute.xlu1 %465 }
 0xbd3   :  { %v1841_v24 = vadd.f32 %v466_v38, %v458_v37 }
 0xbd5   :  { %470 = vrot.lane.b32.xlu0 %v1841_v24, %s1592_s0  ;;  %v477_v39 = vmul.f32 %v1841_v24, %v1841_v24 }
 0xbd7   :  { %479 = vrot.lane.b32.xlu1 %v477_v39, %s1592_s0 }
 0xc47   :  { %v471_v41 = vpop.permute.xlu0 %470 }
 0xc48   :  { %v473_v43 = vsel %vm89_vm0, %v471_v41, 0.0 }
 0xc49   :  { %474 = vadd.xlane.f32.xlu0 %v473_v43  ;;  %v480_v44 = vpop.permute.xlu1 %479 }
 0xc4a   :  { %v482_v45 = vsel %vm89_vm0, %v480_v44, 0.0 }
 0xc4b   :  { %483 = vadd.xlane.f32.xlu1 %v482_v45 }
 0xcd6   :  { %v475_v40 = vpop.xlane.xlu0 %474 }
 0xcd7   :  { %v476_v46 = vmul.f32 0.03125, %v475_v40 }
 0xcd8   :  { %v484_v42 = vpop.xlane.xlu1 %483 }
 0xcd9   :  { %v486_v47 = vmul.f32 %v476_v46, %v476_v46  ;;  %v485_v48 = vmul.f32 0.03125, %v484_v42  ;;  %v488_v51 = vsub.f32 %v1841_v24, %v476_v46 }
 0xcdb   :  { %v487_v49 = vsub.f32 %v485_v48, %v486_v47 }
 0xcdd   :  { %v489_v50 = vadd.f32 1e-05, %v487_v49 }
 0xcdf   :  { %1352 = vrsqrt.f32 %v489_v50 }
 0xce9   :  { %v1353_v52 = vpop.eup %1352 }
 0xcea   :  { %v491_v53 = vmul.f32 %v1353_v52, %v488_v51 }
 0xcec   :  { %v492_v54 = vmul.f32 %v491_v53, %v1783_v59 }
 0xcee   :  { %v493_v55 = vadd.f32 %v492_v54, %v1785_v61 }
 0xcf0   :  { %1354 = vtanh.f32 %v493_v55 }
 0xcfa   :  { %v1355_v56 = vpop.eup %1354 }
 0xcfb   :  { %496 = vrot.lane.b32.xlu0 %v1355_v56, %s1585_s1 }
 0xd6d   :  { %v497_v57 = vpop.permute.xlu0 %496 }
 0xd6e   :  { %v499_v58 = vmul.f32 %v1351_v34, %v497_v57 }
 0xd70   :  { %v1854_v60 = vpack.c.bf16 %v499_v58, %v499_v58 }
 0xd72   :  { %509 = vrot.lane.b32.xlu1 %v1854_v60, %s1591_s14 }
 0xde4   :  { %v510_v62 = vpop.permute.xlu1 %509 }
 0xde5   :  { %1272 = vmatmul.mubr.msk.bf16.vlgmr.msra.gmra.mrb[4].mxu1 %vm89_vm0, %v510_v62 }
 0xde6   :  { %1284 = vmatpush3.bf16.msra.mxu1 %v1722_v3  ;;  %1287 = vmatprep.mubr.msk.bf16.mxu1 %vm1590_vm1, %v1589_v2 }
 0xde7   :  { %1285 = vmatprep.subr.bf16.mxu1 %v1589_v2 }
 0xdea   :  { %1286 = vmatpush3.bf16.msra.mxu1 %v1727_v5 }
 0xdeb   :  { %1299 = vmatprep.subr.bf16.mxu1 %v1589_v2 }
 0xeb8   :  { %v548_v0 = vpop.f32.mrb[4].mxu1 }
 0xeb9   :  { %v549_v1 = vadd.f32 %v1744_v7, %v548_v0  ;;  %v1273_v4 = vpop.f32.mrb[5].mxu1 }
 0xeba   :  { %v551_v8 = vpop.f32.mrb[6].mxu1 }
 0xebb   :  { %557 = vadd.xlane.f32.xlu0 %v549_v1  ;;  %v1274_v9 = vpop.f32.mrb[7].mxu1  ;;  %v560_v10 = vmul.f32 %v549_v1, %v549_v1 }
 0xebd   :  { %561 = vadd.xlane.f32.xlu1 %v560_v10 }
 0xf48   :  { %v558_v11 = vpop.xlane.xlu0 %557 }
 0xf49   :  { %v559_v12 = vmul.f32 0.0078125, %v558_v11 }
 0xf4a   :  { %v562_v13 = vpop.xlane.xlu1 %561 }
 0xf4b   :  { %v564_v14 = vmul.f32 %v559_v12, %v559_v12  ;;  %v563_v15 = vmul.f32 0.0078125, %v562_v13  ;;  %v566_v18 = vsub.f32 %v549_v1, %v559_v12 }
 0xf4d   :  { %v565_v16 = vsub.f32 %v563_v15, %v564_v14 }
 0xf4f   :  { %v567_v17 = vadd.f32 1e-05, %v565_v16 }
 0xf51   :  { %1356 = vrsqrt.f32 %v567_v17 }
 0xf5b   :  { %v1357_v19 = vpop.eup %1356 }
 0xf5c   :  { %v569_v20 = vmul.f32 %v1357_v19, %v566_v18  ;;  %v1896_v19 = vld [vmem:[#allocation6 + $0x10] sm:$0xff]  }
 0xf5e   :  { %v570_v25 = vmul.f32 %v1750_v23, %v569_v20 }
 0xf60   :  { %v571_v27 = vadd.f32 %v1757_v26, %v570_v25 }
 0xf62   :  { %v572_v28 = vadd.f32 %v571_v27, %v556_v22  ;;  %v678_v22 = vunpack.c.l.bf16 %v1896_v19 }
 0xf64   :  { %1358 = vtanh.f32 %v572_v28  ;;  %v1196_v30 = vmul.f32 -1.442695, %v572_v28 }
 0xf66   :  { %1360 = vpow2.f32 %v1196_v30 }
 0xf6e   :  { %v1359_v29 = vpop.eup %1358 }
 0xf6f   :  { %582 = vrot.lane.b32.xlu0 %v1359_v29, %s1585_s1 }
 0xf70   :  { %v1361_v31 = vpop.eup %1360 }
 0xf71   :  { %v576_v32 = vadd.f32 1.0, %v1361_v31 }
 0xf73   :  { %1362 = vrcp.f32 %v576_v32 }
 0xf7d   :  { %v1363_v33 = vpop.eup %1362 }
 0xf7e   :  { %v580_v21 = vmul.f32 %v1363_v33, %v1841_v24 }
 0xfe1   :  { %v583_v34 = vpop.permute.xlu0 %582 }
 0xfe2   :  { %v585_v35 = vmul.f32 %v1363_v33, %v583_v34 }
 0xfe4   :  { %587 = vrot.lane.b32.xlu1 %v585_v35, %s1591_s14 }
0x1056   :  { %v588_v36 = vpop.permute.xlu1 %587 }
0x1057   :  { %v1872_v37 = vadd.f32 %v588_v36, %v580_v21 }
0x1059   :  { %592 = vrot.lane.b32.xlu0 %v1872_v37, %s1592_s0  ;;  %v599_v38 = vmul.f32 %v1872_v37, %v1872_v37 }
0x105b   :  { %601 = vrot.lane.b32.xlu1 %v599_v38, %s1592_s0 }
0x10cb   :  { %v593_v39 = vpop.permute.xlu0 %592 }
0x10cc   :  { %v595_v41 = vsel %vm89_vm0, %v593_v39, 0.0 }
0x10cd   :  { %596 = vadd.xlane.f32.xlu0 %v595_v41  ;;  %v602_v43 = vpop.permute.xlu1 %601 }
0x10ce   :  { %v604_v44 = vsel %vm89_vm0, %v602_v43, 0.0 }
0x10cf   :  { %605 = vadd.xlane.f32.xlu1 %v604_v44 }
0x115a   :  { %v597_v24 = vpop.xlane.xlu0 %596 }
0x115b   :  { %v598_v45 = vmul.f32 0.03125, %v597_v24 }
0x115c   :  { %v606_v40 = vpop.xlane.xlu1 %605 }
0x115d   :  { %v608_v46 = vmul.f32 %v598_v45, %v598_v45  ;;  %v607_v42 = vmul.f32 0.03125, %v606_v40  ;;  %v610_v49 = vsub.f32 %v1872_v37, %v598_v45 }
0x115f   :  { %v609_v47 = vsub.f32 %v607_v42, %v608_v46 }
0x1161   :  { %v611_v48 = vadd.f32 1e-05, %v609_v47 }
0x1163   :  { %1364 = vrsqrt.f32 %v611_v48 }
0x116d   :  { %v1365_v50 = vpop.eup %1364 }
0x116e   :  { %v613_v51 = vmul.f32 %v1365_v50, %v610_v49 }
0x1170   :  { %v614_v52 = vmul.f32 %v613_v51, %v1783_v59 }
0x1172   :  { %v615_v53 = vadd.f32 %v614_v52, %v1785_v61 }
0x1174   :  { %1366 = vtanh.f32 %v615_v53 }
0x117e   :  { %v1367_v54 = vpop.eup %1366 }
0x117f   :  { %618 = vrot.lane.b32.xlu0 %v1367_v54, %s1585_s1 }
0x11f1   :  { %v619_v55 = vpop.permute.xlu0 %618 }
0x11f2   :  { %v621_v56 = vmul.f32 %v1363_v33, %v619_v55 }
0x11f4   :  { %v1885_v57 = vpack.c.bf16 %v621_v56, %v621_v56 }
0x11f6   :  { %631 = vrot.lane.b32.xlu1 %v1885_v57, %s1591_s14 }
0x1268   :  { %v632_v58 = vpop.permute.xlu1 %631 }
0x1269   :  { %1280 = vmatmul.mubr.msk.bf16.vlgmr.msra.gmra.mrb[8].mxu0 %vm89_vm0, %v632_v58 }
0x126a   :  { %1292 = vmatpush3.bf16.msra.mxu0 %v1722_v3  ;;  %1295 = vmatprep.mubr.msk.bf16.mxu0 %vm1590_vm1, %v1589_v2 }
0x126b   :  { %1293 = vmatprep.subr.bf16.mxu0 %v1589_v2 }
0x126e   :  { %1294 = vmatpush3.bf16.msra.mxu0 %v1727_v5 }
0x133c   :  { %v670_v62 = vpop.f32.mrb[8].mxu0 }
0x133d   :  { %v671_v0 = vadd.f32 %v1744_v7, %v670_v62  ;;  %v1281_v1 = vpop.f32.mrb[9].mxu0 }
0x133e   :  { %v673_v4 = vpop.f32.mrb[10].mxu0 }
0x133f   :  { %679 = vadd.xlane.f32.xlu0 %v671_v0  ;;  %v1282_v8 = vpop.f32.mrb[11].mxu0  ;;  %v682_v9 = vmul.f32 %v671_v0, %v671_v0 }
0x1341   :  { %683 = vadd.xlane.f32.xlu1 %v682_v9 }
0x13cc   :  { %v680_v10 = vpop.xlane.xlu0 %679 }
0x13cd   :  { %v681_v11 = vmul.f32 0.0078125, %v680_v10 }
0x13ce   :  { %v684_v12 = vpop.xlane.xlu1 %683 }
0x13cf   :  { %v686_v13 = vmul.f32 %v681_v11, %v681_v11  ;;  %v685_v14 = vmul.f32 0.0078125, %v684_v12  ;;  %v688_v17 = vsub.f32 %v671_v0, %v681_v11 }
0x13d1   :  { %v687_v15 = vsub.f32 %v685_v14, %v686_v13 }
0x13d3   :  { %v689_v16 = vadd.f32 1e-05, %v687_v15 }
0x13d5   :  { %1368 = vrsqrt.f32 %v689_v16 }
0x13df   :  { %v1369_v18 = vpop.eup %1368 }
0x13e0   :  { %v691_v20 = vmul.f32 %v1369_v18, %v688_v17  ;;  %v800_v18 = vunpack.c.h.bf16 %v1896_v19 }
0x13e2   :  { %v692_v25 = vmul.f32 %v1750_v23, %v691_v20 }
0x13e4   :  { %v693_v27 = vadd.f32 %v1757_v26, %v692_v25 }
0x13e6   :  { %v694_v28 = vadd.f32 %v693_v27, %v678_v22 }
0x13e8   :  { %1370 = vtanh.f32 %v694_v28  ;;  %v1199_v30 = vmul.f32 -1.442695, %v694_v28 }
0x13ea   :  { %1372 = vpow2.f32 %v1199_v30 }
0x13f2   :  { %v1371_v29 = vpop.eup %1370 }
0x13f3   :  { %704 = vrot.lane.b32.xlu0 %v1371_v29, %s1585_s1 }
0x13f4   :  { %v1373_v31 = vpop.eup %1372 }
0x13f5   :  { %v698_v32 = vadd.f32 1.0, %v1373_v31 }
0x13f7   :  { %1374 = vrcp.f32 %v698_v32 }
0x1401   :  { %v1375_v33 = vpop.eup %1374 }
0x1402   :  { %v702_v21 = vmul.f32 %v1375_v33, %v1872_v37 }
0x1465   :  { %v705_v34 = vpop.permute.xlu0 %704 }
0x1466   :  { %v707_v35 = vmul.f32 %v1375_v33, %v705_v34 }
0x1468   :  { %709 = vrot.lane.b32.xlu1 %v707_v35, %s1591_s14 }
0x14da   :  { %v710_v36 = vpop.permute.xlu1 %709 }
0x14db   :  { %v1904_v38 = vadd.f32 %v710_v36, %v702_v21 }
0x14dd   :  { %714 = vrot.lane.b32.xlu0 %v1904_v38, %s1592_s0  ;;  %v721_v39 = vmul.f32 %v1904_v38, %v1904_v38 }
0x14df   :  { %723 = vrot.lane.b32.xlu1 %v721_v39, %s1592_s0 }
0x154f   :  { %v715_v41 = vpop.permute.xlu0 %714 }
0x1550   :  { %v717_v43 = vsel %vm89_vm0, %v715_v41, 0.0 }
0x1551   :  { %718 = vadd.xlane.f32.xlu0 %v717_v43  ;;  %v724_v44 = vpop.permute.xlu1 %723 }
0x1552   :  { %v726_v24 = vsel %vm89_vm0, %v724_v44, 0.0 }
0x1553   :  { %727 = vadd.xlane.f32.xlu1 %v726_v24 }
0x15de   :  { %v719_v37 = vpop.xlane.xlu0 %718 }
0x15df   :  { %v720_v45 = vmul.f32 0.03125, %v719_v37 }
0x15e0   :  { %v728_v40 = vpop.xlane.xlu1 %727 }
0x15e1   :  { %v730_v46 = vmul.f32 %v720_v45, %v720_v45  ;;  %v729_v42 = vmul.f32 0.03125, %v728_v40  ;;  %v732_v49 = vsub.f32 %v1904_v38, %v720_v45 }
0x15e3   :  { %v731_v47 = vsub.f32 %v729_v42, %v730_v46 }
0x15e5   :  { %v733_v48 = vadd.f32 1e-05, %v731_v47 }
0x15e7   :  { %1376 = vrsqrt.f32 %v733_v48 }
0x15f1   :  { %v1377_v50 = vpop.eup %1376 }
0x15f2   :  { %v735_v51 = vmul.f32 %v1377_v50, %v732_v49 }
0x15f4   :  { %v736_v52 = vmul.f32 %v735_v51, %v1783_v59 }
0x15f6   :  { %v737_v53 = vadd.f32 %v736_v52, %v1785_v61 }
0x15f8   :  { %1378 = vtanh.f32 %v737_v53 }
0x1602   :  { %v1379_v54 = vpop.eup %1378 }
0x1603   :  { %740 = vrot.lane.b32.xlu0 %v1379_v54, %s1585_s1 }
0x1675   :  { %v741_v55 = vpop.permute.xlu0 %740 }
0x1676   :  { %v743_v56 = vmul.f32 %v1375_v33, %v741_v55 }
0x1678   :  { %v1917_v58 = vpack.c.bf16 %v743_v56, %v743_v56 }
0x167a   :  { %753 = vrot.lane.b32.xlu1 %v1917_v58, %s1591_s14 }
0x16ec   :  { %v754_v62 = vpop.permute.xlu1 %753 }
0x16ed   :  { %1288 = vmatmul.mubr.msk.bf16.vlgmr.msra.gmra.mrb[8].mxu1 %vm89_vm0, %v754_v62 }
0x16ee   :  { %1300 = vmatpush3.bf16.msra.mxu1 %v1722_v3  ;;  %1303 = vmatprep.mubr.msk.bf16.mxu1 %vm1590_vm1, %v1589_v2 }
0x16ef   :  { %1301 = vmatprep.subr.bf16.mxu1 %v1589_v2 }
0x16f2   :  { %1302 = vmatpush3.bf16.msra.mxu1 %v1727_v5 }
0x17c0   :  { %v792_v0 = vpop.f32.mrb[8].mxu1 }
0x17c1   :  { %v793_v1 = vadd.f32 %v1744_v7, %v792_v0  ;;  %v1289_v4 = vpop.f32.mrb[9].mxu1 }
0x17c2   :  { %v795_v8 = vpop.f32.mrb[10].mxu1 }
0x17c3   :  { %801 = vadd.xlane.f32.xlu0 %v793_v1  ;;  %v1290_v9 = vpop.f32.mrb[11].mxu1  ;;  %v804_v10 = vmul.f32 %v793_v1, %v793_v1 }
0x17c5   :  { %805 = vadd.xlane.f32.xlu1 %v804_v10 }
0x1850   :  { %v802_v11 = vpop.xlane.xlu0 %801 }
0x1851   :  { %v803_v12 = vmul.f32 0.0078125, %v802_v11 }
0x1852   :  { %v806_v13 = vpop.xlane.xlu1 %805 }
0x1853   :  { %v808_v3 = vmul.f32 %v803_v12, %v803_v12  ;;  %v807_v14 = vmul.f32 0.0078125, %v806_v13  ;;  %v810_v2 = vsub.f32 %v793_v1, %v803_v12 }
0x1855   :  { %v809_v15 = vsub.f32 %v807_v14, %v808_v3 }
0x1857   :  { %v811_v16 = vadd.f32 1e-05, %v809_v15 }
0x1859   :  { %1380 = vrsqrt.f32 %v811_v16 }
0x1863   :  { %v1381_v17 = vpop.eup %1380 }
0x1864   :  { %v813_v5 = vmul.f32 %v1381_v17, %v810_v2  ;;  %v1953_v2 = vld [vmem:[#allocation6 + $0x18] sm:$0xff]  }
0x1866   :  { %v814_v20 = vmul.f32 %v1750_v23, %v813_v5 }
0x1868   :  { %v815_v22 = vadd.f32 %v1757_v26, %v814_v20 }
0x186a   :  { %v816_v25 = vadd.f32 %v815_v22, %v800_v18 }
0x186c   :  { %1382 = vtanh.f32 %v816_v25  ;;  %v1202_v28 = vmul.f32 -1.442695, %v816_v25 }
0x186e   :  { %1384 = vpow2.f32 %v1202_v28 }
0x1876   :  { %v1383_v27 = vpop.eup %1382 }
0x1877   :  { %826 = vrot.lane.b32.xlu0 %v1383_v27, %s1585_s1 }
0x1878   :  { %v1385_v29 = vpop.eup %1384 }
0x1879   :  { %v820_v30 = vadd.f32 1.0, %v1385_v29 }
0x187b   :  { %1386 = vrcp.f32 %v820_v30 }
0x1885   :  { %v1387_v31 = vpop.eup %1386 }
0x1886   :  { %v824_v19 = vmul.f32 %v1387_v31, %v1904_v38 }
0x18e9   :  { %v827_v32 = vpop.permute.xlu0 %826 }
0x18ea   :  { %v829_v33 = vmul.f32 %v1387_v31, %v827_v32 }
0x18ec   :  { %831 = vrot.lane.b32.xlu1 %v829_v33, %s1591_s14 }
0x195e   :  { %v832_v34 = vpop.permute.xlu1 %831 }
0x195f   :  { %v1934_v35 = vadd.f32 %v832_v34, %v824_v19 }
0x1961   :  { %836 = vrot.lane.b32.xlu0 %v1934_v35, %s1592_s0  ;;  %v843_v21 = vmul.f32 %v1934_v35, %v1934_v35 }
0x1963   :  { %845 = vrot.lane.b32.xlu1 %v843_v21, %s1592_s0 }
0x19d3   :  { %v837_v36 = vpop.permute.xlu0 %836 }
0x19d4   :  { %v839_v39 = vsel %vm89_vm0, %v837_v36, 0.0 }
0x19d5   :  { %840 = vadd.xlane.f32.xlu0 %v839_v39  ;;  %v846_v41 = vpop.permute.xlu1 %845 }
0x19d6   :  { %v848_v43 = vsel %vm89_vm0, %v846_v41, 0.0 }
0x19d7   :  { %849 = vadd.xlane.f32.xlu1 %v848_v43 }
0x1a62   :  { %v841_v38 = vpop.xlane.xlu0 %840 }
0x1a63   :  { %v842_v44 = vmul.f32 0.03125, %v841_v38 }
0x1a64   :  { %v850_v24 = vpop.xlane.xlu1 %849 }
0x1a65   :  { %v852_v37 = vmul.f32 %v842_v44, %v842_v44  ;;  %v851_v45 = vmul.f32 0.03125, %v850_v24  ;;  %v854_v42 = vsub.f32 %v1934_v35, %v842_v44 }
0x1a67   :  { %v853_v40 = vsub.f32 %v851_v45, %v852_v37 }
0x1a69   :  { %v855_v46 = vadd.f32 1e-05, %v853_v40 }
0x1a6b   :  { %1388 = vrsqrt.f32 %v855_v46 }
0x1a75   :  { %v1389_v47 = vpop.eup %1388 }
0x1a76   :  { %v857_v48 = vmul.f32 %v1389_v47, %v854_v42 }
0x1a78   :  { %v858_v49 = vmul.f32 %v857_v48, %v1783_v59 }
0x1a7a   :  { %v859_v50 = vadd.f32 %v858_v49, %v1785_v61 }
0x1a7c   :  { %1390 = vtanh.f32 %v859_v50 }
0x1a86   :  { %v1391_v51 = vpop.eup %1390 }
0x1a87   :  { %862 = vrot.lane.b32.xlu0 %v1391_v51, %s1585_s1 }
0x1af9   :  { %v863_v52 = vpop.permute.xlu0 %862 }
0x1afa   :  { %v865_v53 = vmul.f32 %v1387_v31, %v863_v52 }
0x1afc   :  { %v1947_v54 = vpack.c.bf16 %v865_v53, %v865_v53  ;;  %v1416_v53 = vld [vmem:[%s2084_s4] ss:$0 sm:$0xff] }
0x1afe   :  { %875 = vrot.lane.b32.xlu1 %v1947_v54, %s1591_s14 }
0x1b70   :  { %v876_v55 = vpop.permute.xlu1 %875 }
0x1b71   :  { %1296 = vmatmul.mubr.msk.bf16.vlgmr.msra.gmra.mrb[12].mxu0 %vm89_vm0, %v876_v55 }
0x1c44   :  { %v914_v56 = vpop.f32.mrb[12].mxu0 }
0x1c45   :  { %v915_v62 = vadd.f32 %v1744_v7, %v914_v56  ;;  %v1297_v0 = vpop.f32.mrb[13].mxu0  ;;  %v922_v7 = vunpack.c.l.bf16 %v1953_v2 }
0x1c46   :  { %v917_v1 = vpop.f32.mrb[14].mxu0 }
0x1c47   :  { %923 = vadd.xlane.f32.xlu0 %v915_v62  ;;  %v1298_v4 = vpop.f32.mrb[15].mxu0  ;;  %v926_v8 = vmul.f32 %v915_v62, %v915_v62 }
0x1c49   :  { %927 = vadd.xlane.f32.xlu1 %v926_v8 }
0x1cd4   :  { %v924_v9 = vpop.xlane.xlu0 %923 }
0x1cd5   :  { %v925_v10 = vmul.f32 0.0078125, %v924_v9 }
0x1cd6   :  { %v928_v11 = vpop.xlane.xlu1 %927 }
0x1cd7   :  { %v930_v12 = vmul.f32 %v925_v10, %v925_v10  ;;  %v929_v13 = vmul.f32 0.0078125, %v928_v11  ;;  %v932_v15 = vsub.f32 %v915_v62, %v925_v10 }
0x1cd9   :  { %v931_v3 = vsub.f32 %v929_v13, %v930_v12 }
0x1cdb   :  { %v933_v14 = vadd.f32 1e-05, %v931_v3 }
0x1cdd   :  { %1392 = vrsqrt.f32 %v933_v14 }
0x1ce7   :  { %v1393_v16 = vpop.eup %1392 }
0x1ce8   :  { %v935_v17 = vmul.f32 %v1393_v16, %v932_v15  ;;  %v1044_v16 = vunpack.c.h.bf16 %v1953_v2 }
0x1cea   :  { %v936_v5 = vmul.f32 %v1750_v23, %v935_v17  ;;  %v1417_v17 = vld [vmem:[%s2085_s5] ss:$0 sm:$0xff]  ;;  %s1593_s5 = smov [#allocation13]  }
0x1cec   :  { %v937_v18 = vadd.f32 %v1757_v26, %v936_v5  ;;  %v1418_v5 = vld [vmem:[%s2086_s6] ss:$0 sm:$0xff]  ;;  %s1148_s6 = sshll.u32 %s1593_s5, 4  ;;  %s1149_s6 = int_to_ptr.vmem [resolvable:$true] %s1148_s6 }
0x1ced   :  { %s1507_s25 = scalar_lea.vmem %s1149_s6, 128  ;;  %p1512_p5 = scmp.lt.s32.totalorder %s1149_s6, %s1149_s6 }
0x1cee   :  { %v938_v20 = vadd.f32 %v937_v18, %v922_v7  ;;  %p1508_p4 = scmp.ne.s32.totalorder %s1149_s6, %s1507_s25  ;;  %p1513_p6 = scmp.lt.s32.totalorder %s1507_s25, %s1507_s25 }
0x1cf0   :  { %1394 = vtanh.f32 %v938_v20  ;;  %v1205_v25 = vmul.f32 -1.442695, %v938_v20  ;;  %p1514_p7 = por %p1513_p6, %p1512_p5 }
0x1cf2   :  { %1396 = vpow2.f32 %v1205_v25  ;;  %p1515_p8 = pnand %p1514_p7, %p1508_p4 }
0x1cfa   :  { %v1395_v22 = vpop.eup %1394 }
0x1cfb   :  { %948 = vrot.lane.b32.xlu0 %v1395_v22, %s1585_s1 }
0x1cfc   :  { %v1397_v27 = vpop.eup %1396 }
0x1cfd   :  { %v942_v28 = vadd.f32 1.0, %v1397_v27 }
0x1cff   :  { %1398 = vrcp.f32 %v942_v28 }
0x1d09   :  { %v1399_v29 = vpop.eup %1398 }
0x1d0a   :  { %v946_v32 = vmul.f32 %v1399_v29, %v1934_v35 }
0x1d6d   :  { %v949_v30 = vpop.permute.xlu0 %948 }
0x1d6e   :  { %v951_v31 = vmul.f32 %v1399_v29, %v949_v30 }
0x1d70   :  { %953 = vrot.lane.b32.xlu1 %v951_v31, %s1591_s14 }
0x1de2   :  { %v954_v23 = vpop.permute.xlu1 %953 }
0x1de3   :  { %v1961_v33 = vadd.f32 %v954_v23, %v946_v32 }
0x1de5   :  { %958 = vrot.lane.b32.xlu0 %v1961_v33, %s1592_s0  ;;  %v965_v26 = vmul.f32 %v1961_v33, %v1961_v33 }
0x1de7   :  { %967 = vrot.lane.b32.xlu1 %v965_v26, %s1592_s0 }
0x1e57   :  { %v959_v19 = vpop.permute.xlu0 %958 }
0x1e58   :  { %v961_v34 = vsel %vm89_vm0, %v959_v19, 0.0 }
0x1e59   :  { %962 = vadd.xlane.f32.xlu0 %v961_v34  ;;  %v968_v21 = vpop.permute.xlu1 %967 }
0x1e5a   :  { %v970_v36 = vsel %vm89_vm0, %v968_v21, 0.0 }
0x1e5b   :  { %971 = vadd.xlane.f32.xlu1 %v970_v36 }
0x1ee6   :  { %v963_v35 = vpop.xlane.xlu0 %962 }
0x1ee7   :  { %v964_v39 = vmul.f32 0.03125, %v963_v35 }
0x1ee8   :  { %v972_v41 = vpop.xlane.xlu1 %971 }
0x1ee9   :  { %v974_v43 = vmul.f32 %v964_v39, %v964_v39  ;;  %v973_v38 = vmul.f32 0.03125, %v972_v41  ;;  %v976_v37 = vsub.f32 %v1961_v33, %v964_v39 }
0x1eeb   :  { %v975_v44 = vsub.f32 %v973_v38, %v974_v43 }
0x1eed   :  { %v977_v24 = vadd.f32 1e-05, %v975_v44 }
0x1eef   :  { %1400 = vrsqrt.f32 %v977_v24 }
0x1ef9   :  { %v1401_v45 = vpop.eup %1400 }
0x1efa   :  { %v979_v40 = vmul.f32 %v1401_v45, %v976_v37 }
0x1efc   :  { %v980_v46 = vmul.f32 %v979_v40, %v1783_v59 }
0x1efe   :  { %v981_v42 = vadd.f32 %v980_v46, %v1785_v61 }
0x1f00   :  { %1402 = vtanh.f32 %v981_v42 }
0x1f0a   :  { %v1403_v47 = vpop.eup %1402 }
0x1f0b   :  { %984 = vrot.lane.b32.xlu0 %v1403_v47, %s1585_s1 }
0x1f7d   :  { %v985_v48 = vpop.permute.xlu0 %984 }
0x1f7e   :  { %v987_v49 = vmul.f32 %v1399_v29, %v985_v48 }
0x1f80   :  { %v1974_v50 = vpack.c.bf16 %v987_v49, %v987_v49 }
0x1f82   :  { %997 = vrot.lane.b32.xlu1 %v1974_v50, %s1591_s14 }
0x1ff4   :  { %v998_v51 = vpop.permute.xlu1 %997 }
0x1ff5   :  { %1304 = vmatmul.mubr.msk.bf16.vlgmr.msra.gmra.mrb[12].mxu1 %vm89_vm0, %v998_v51 }
0x20c8   :  { %v1036_v52 = vpop.f32.mrb[12].mxu1 }
0x20c9   :  { %v1037_v55 = vadd.f32 %v1416_v53, %v1036_v52  ;;  %v1305_v56 = vpop.f32.mrb[13].mxu1 }
0x20ca   :  { %v1039_v62 = vpop.f32.mrb[14].mxu1 }
0x20cb   :  { %1045 = vadd.xlane.f32.xlu0 %v1037_v55  ;;  %v1306_v0 = vpop.f32.mrb[15].mxu1  ;;  %v1048_v1 = vmul.f32 %v1037_v55, %v1037_v55 }
0x20cd   :  { %1049 = vadd.xlane.f32.xlu1 %v1048_v1 }
0x2158   :  { %v1046_v4 = vpop.xlane.xlu0 %1045 }
0x2159   :  { %v1047_v8 = vmul.f32 0.0078125, %v1046_v4 }
0x215a   :  { %v1050_v9 = vpop.xlane.xlu1 %1049 }
0x215b   :  { %v1052_v10 = vmul.f32 %v1047_v8, %v1047_v8  ;;  %v1051_v11 = vmul.f32 0.0078125, %v1050_v9  ;;  %v1054_v3 = vsub.f32 %v1037_v55, %v1047_v8 }
0x215d   :  { %v1053_v12 = vsub.f32 %v1051_v11, %v1052_v10 }
0x215f   :  { %v1055_v13 = vadd.f32 1e-05, %v1053_v12 }
0x2161   :  { %1404 = vrsqrt.f32 %v1055_v13 }
0x216b   :  { %v1405_v14 = vpop.eup %1404 }
0x216c   :  { %v1057_v15 = vmul.f32 %v1405_v14, %v1054_v3 }
0x216e   :  { %v1058_v7 = vmul.f32 %v1417_v17, %v1057_v15 }
0x2170   :  { %v1059_v18 = vadd.f32 %v1418_v5, %v1058_v7 }
0x2172   :  { %v1060_v20 = vadd.f32 %v1059_v18, %v1044_v16 }
0x2174   :  { %1406 = vtanh.f32 %v1060_v20  ;;  %v1208_v25 = vmul.f32 -1.442695, %v1060_v20 }
0x2176   :  { %1408 = vpow2.f32 %v1208_v25 }
0x217e   :  { %v1407_v22 = vpop.eup %1406 }
0x217f   :  { %1070 = vrot.lane.b32.xlu0 %v1407_v22, %s1585_s1 }
0x2180   :  { %v1409_v27 = vpop.eup %1408 }
0x2181   :  { %v1064_v28 = vadd.f32 1.0, %v1409_v27 }
0x2183   :  { %1410 = vrcp.f32 %v1064_v28 }
0x218d   :  { %v1411_v2 = vpop.eup %1410 }
0x218e   :  { %v1068_v31 = vmul.f32 %v1411_v2, %v1961_v33 }
0x21f1   :  { %v1071_v29 = vpop.permute.xlu0 %1070 }
0x21f2   :  { %v1073_v30 = vmul.f32 %v1411_v2, %v1071_v29 }
0x21f4   :  { %1075 = vrot.lane.b32.xlu1 %v1073_v30, %s1591_s14 }
0x2266   :  { %v1076_v32 = vpop.permute.xlu1 %1075 }
0x2267   :  { %v1078_v23 = vadd.f32 %v1076_v32, %v1068_v31 }
0x2269   :  { %1080 = vrot.lane.b32.xlu0 %v1078_v23, %s1592_s0  ;;  %v1087_v26 = vmul.f32 %v1078_v23, %v1078_v23 }
0x226b   :  { %1089 = vrot.lane.b32.xlu1 %v1087_v26, %s1592_s0 }
0x226d   :  { %260 = vrot.lane.b32.xlu0 %v1790_v6, %s1591_s14 }
0x22db   :  { %v1081_v19 = vpop.permute.xlu0 %1080 }
0x22dc   :  { %1124 = vst.msk [vmem:[#allocation3] sm:$0xff] %vm89_vm0, %v1081_v19  ;;  %1129 = vst.msk [vmem:[#allocation15] sm:$0xff] %vm89_vm0, %v1081_v19  ;;  %v1083_v34 = vsel %vm89_vm0, %v1081_v19, 0.0 }
0x22dd   :  { %1084 = vadd.xlane.f32.xlu1 %v1083_v34  ;;  %v1090_v21 = vpop.permute.xlu1 %1089 }
0x22de   :  { %v1092_v33 = vsel %vm89_vm0, %v1090_v21, 0.0 }
0x22df   :  { %v261_v36 = vpop.permute.xlu0 %260  ;;  %1093 = vadd.xlane.f32.xlu0 %v1092_v33 }
0x22e0   :  { %264 = vst.msk [vmem:[#allocation12] sm:$0xf] %vm263_vm2, %v261_v36 }
0x22ee   :  { %504 = vrot.lane.b32.xlu1 %v1854_v60, %s1591_s14 }
0x22f2   :  { %626 = vrot.lane.b32.xlu1 %v1885_v57, %s1591_s14 }
0x22f5   :  { %382 = vrot.lane.b32.xlu0 %v1821_v63, %s1591_s14 }
0x22f6   :  { %870 = vrot.lane.b32.xlu1 %v1947_v54, %s1591_s14 }
0x22f9   :  { %748 = vrot.lane.b32.xlu0 %v1917_v58, %s1591_s14 }
0x22fd   :  { %992 = vrot.lane.b32.xlu0 %v1974_v50, %s1591_s14 }
0x236a   :  { %v1085_v6 = vpop.xlane.xlu1 %1084 }
0x236b   :  { %v1086_v35 = vmul.f32 0.03125, %v1085_v6 }
0x236c   :  { %v1094_v39 = vpop.xlane.xlu0 %1093 }
0x236d   :  { %v1096_v41 = vmul.f32 %v1086_v35, %v1086_v35  ;;  %v1095_v60 = vmul.f32 0.03125, %v1094_v39  ;;  %v1098_v37 = vsub.f32 %v1078_v23, %v1086_v35 }
0x236e   :  { %v505_v43 = vpop.permute.xlu1 %504 }
0x236f   :  { %v1097_v38 = vsub.f32 %v1095_v60, %v1096_v41  ;;  %508 = vst.msk [vmem:[#allocation12 + $0x8] sm:$0xf] %vm263_vm2, %v505_v43 }
0x2370   :  { %v383_v57 = vpop.permute.xlu0 %382 }
0x2371   :  { %v1099_v63 = vadd.f32 1e-05, %v1097_v38  ;;  %386 = vst.msk [vmem:[#allocation12 + $0x4] sm:$0xf] %vm263_vm2, %v383_v57 }
0x2372   :  { %v627_v54 = vpop.permute.xlu1 %626 }
0x2373   :  { %1412 = vrsqrt.f32 %v1099_v63  ;;  %630 = vst.msk [vmem:[#allocation12 + $0xc] sm:$0xf] %vm263_vm2, %v627_v54 }
0x2374   :  { %v749_v58 = vpop.permute.xlu0 %748 }
0x2375   :  { %752 = vst.msk [vmem:[#allocation12 + $0x10] sm:$0xf] %vm263_vm2, %v749_v58 }
0x2376   :  { %v871_v44 = vpop.permute.xlu1 %870 }
0x2377   :  { %874 = vst.msk [vmem:[#allocation12 + $0x14] sm:$0xf] %vm263_vm2, %v871_v44 }
0x2378   :  { %v993_v24 = vpop.permute.xlu0 %992 }
0x2379   :  { %996 = vst.msk [vmem:[#allocation12 + $0x18] sm:$0xf] %vm263_vm2, %v993_v24 }
0x237d   :  { %v1413_v45 = vpop.eup %1412 }
0x237e   :  { %v1101_v40 = vmul.f32 %v1413_v45, %v1098_v37 }
0x2380   :  { %v1102_v46 = vmul.f32 %v1101_v40, %v1783_v59 }
0x2382   :  { %v1103_v42 = vadd.f32 %v1102_v46, %v1785_v61 }
0x2384   :  { %1414 = vtanh.f32 %v1103_v42 }
0x238e   :  { %v1415_v47 = vpop.eup %1414 }
0x238f   :  { %1106 = vrot.lane.b32.xlu1 %v1415_v47, %s1585_s1 }
0x2401   :  { %v1107_v48 = vpop.permute.xlu1 %1106 }
0x2402   :  { %v1109_v49 = vmul.f32 %v1411_v2, %v1107_v48 }
0x2404   :  { %v1218_v50 = vpack.c.bf16 %v1109_v49, %v1109_v49  ;;  %1120 = vrot.lane.b32.xlu1 %v1109_v49, %s1591_s14 }
0x2406   :  { %1114 = vrot.lane.b32.xlu0 %v1218_v50, %s1591_s14 }
0x2476   :  { %v1121_v59 = vpop.permute.xlu1 %1120 }
0x2477   :  { %1123 = vst.msk [vmem:[#allocation2] sm:$0xff] %vm89_vm0, %v1121_v59  ;;  %1128 = vst.msk [vmem:[#allocation13] sm:$0xff] %vm89_vm0, %v1121_v59 }
0x2478   :  { %v1115_v61 = vpop.permute.xlu0 %1114 }
0x2479   :  { %1518 = shalt.err (!%p1515_p8)
}
0x247a   :  { %s1519_s28 = scalar_lea.hbm %s2090_s10, 128 }
0x247b   :  { %p1520_p9 = scmp.ne.s32.totalorder %s2090_s10, %s1519_s28  ;;  %p1523_p10 = scmp.lt.u32.totalorder %s1519_s28, %s2090_s10 }
0x247d   :  { %p1525_p11 = pnand %p1523_p10, %p1520_p9 }
0x247f   :  { %1528 = shalt.err (!%p1525_p11)
}
0x2480   :  { %1151 = dma.vmem_to_hbm [thread:$0]  %s1149_s6, 128, %s2090_s10, [#allocation14]   ;;  %1118 = vst.msk [vmem:[#allocation12 + $0x1c] sm:$0xf] %vm263_vm2, %v1115_v61 }
0x2481   :  { %s1529_s20 = scalar_lea.vmem %s2024_s24, 128  ;;  %p1534_p13 = scmp.lt.s32.totalorder %s2024_s24, %s2024_s24 }
0x2482   :  { %p1530_p12 = scmp.ne.s32.totalorder %s2024_s24, %s1529_s20  ;;  %p1535_p0 = scmp.lt.s32.totalorder %s1529_s20, %s1529_s20 }
0x2484   :  { %p1536_p1 = por %p1535_p0, %p1534_p13 }
0x2486   :  { %p1537_p2 = pnand %p1536_p1, %p1530_p12 }
0x2488   :  { %1540 = shalt.err (!%p1537_p2)
}
0x2489   :  { %s1541_s17 = scalar_lea.hbm %s2091_s11, 128 }
0x248a   :  { %p1542_p3 = scmp.ne.s32.totalorder %s2091_s11, %s1541_s17  ;;  %p1545_p4 = scmp.lt.u32.totalorder %s1541_s17, %s2091_s11 }
0x248c   :  { %p1547_p5 = pnand %p1545_p4, %p1542_p3 }
0x248e   :  { %1550 = shalt.err (!%p1547_p5)
}
0x248f   :  { %1161 = dma.vmem_to_hbm [thread:$0]  %s2024_s24, 128, %s2091_s11, [#allocation14]  }
0x2490   :  { %s1551_s22 = scalar_lea.vmem %s2028_s2, 512  ;;  %p1556_p7 = scmp.lt.s32.totalorder %s2028_s2, %s2028_s2 }
0x2491   :  { %p1552_p6 = scmp.ne.s32.totalorder %s2028_s2, %s1551_s22  ;;  %p1557_p8 = scmp.lt.s32.totalorder %s1551_s22, %s1551_s22 }
0x2493   :  { %p1558_p9 = por %p1557_p8, %p1556_p7 }
0x2495   :  { %p1559_p10 = pnand %p1558_p9, %p1552_p6 }
0x2497   :  { %1562 = shalt.err (!%p1559_p10)
}
0x2498   :  { %s1563_s23 = scalar_lea.hbm %s2089_s9, 512 }
0x2499   :  { %p1564_p11 = scmp.ne.s32.totalorder %s2089_s9, %s1563_s23  ;;  %p1567_p12 = scmp.lt.u32.totalorder %s1563_s23, %s2089_s9 }
0x249b   :  { %p1569_p13 = pnand %p1567_p12, %p1564_p11 }
0x249d   :  { %1572 = shalt.err (!%p1569_p13)
}
0x249e   :  { %1141 = dma.vmem_to_hbm [thread:$0]  %s2028_s2, 512, %s2089_s9, [#allocation8], %s1585_s1, %s1585_s1, %s1586_s18  }
0x249f   :  { %1579 = dma.done.wait [#allocation8], 512  }
0x24a0   :  { %1580 = vsyncadd [#allocation8], 4294966784 }
0x24a1   :  { %1581 = dma.done.wait [#allocation14], 256  }
0x24a2   :  { %1582 = vsyncadd [#allocation14], 4294967040 }
0x24a3   :  { %1171 = vsyncpa [#allocation7], 1 }
0x24a4   :  { %1172 = vsyncpa [#allocation10], 1 }
0x24a5   :  { %1173 = vsyncpa [#allocation8], 1 }
0x24a6   :  { %1174 = vsyncpa [#allocation14], 1 }
0x24a7   :  { %1175 = vsyncmov [#allocation5] }
0x24aa   :  { %s1176_s28 = vpop.sfrf %1175 }
0x24ab   :  { %p1210_p0 = scmp.ne.s32.totalorder %s1176_s28, 0 }
0x24ad   :  { %1180 = shalt.err (%p1210_p0)  }

</bundles_post_ra>
